<compile_context>
chip_gen: v7x
topology: tpu7x:2x2x1
jax: 0.10.0
libtpu: 0.0.40
codegen_flags: <defaults>
</compile_context>

<pallas_src>
from functools import partial

import jax
import jax.numpy as jnp
from jax import lax
from jax.experimental import pallas as pl
from jax.experimental.pallas import tpu as pltpu


# ----------------------------------------------------------------------------
# Kernel
# ----------------------------------------------------------------------------
def gatconv_kernel(x_ref, adj_ref, ww_ref, bw_ref, aw_ref, gb_ref, out_ref,
                   *, n_head, out_dim, compute_dtype):
    """One grid step processes TB batch elements entirely in VMEM."""
    cdt = compute_dtype
    TB, N, in_dim = x_ref.shape
    D = out_dim
    H = n_head
    HD = H * D

    x2 = x_ref[...].reshape(TB * N, in_dim)                  # (TB*N, in_dim) cdt

    # ---- single wide MXU matmul: every adj-independent affine map at once --
    #   cols [0      , HD)       : hx_all  = per-head input projections (+bias)
    #   cols [HD     , 2HD)      : y_all   = hx_h @ att_h^T   (block-diag fold)
    #   cols [2HD    , 2HD+D)    : xf      = fc(x)
    #   cols [2HD+D  , 2HD+2D)   : xg      = gate1(fc(x))
    big = lax.dot_general(x2, ww_ref[...], (((1,), (0,)), ((), ())),
                          preferred_element_type=jnp.float32) + bw_ref[...]
    hx_all = big[:, :HD]
    y_all = big[:, HD:2 * HD]
    xf = big[:, 2 * HD:2 * HD + D]
    xg = big[:, 2 * HD + D:2 * HD + 2 * D]

    adj = adj_ref[...].astype(cdt)                           # (TB, N, N)

    # ---- adjacency-coupled per-head part (inherently per-batch) ------------
    heads = []
    for h in range(H):  # TODO(synk): move to lax.fori_loop / grid axis if H*N grows
        hx_h3 = hx_all[:, h * D:(h + 1) * D].astype(cdt).reshape(TB, N, D)
        y_h3 = y_all[:, h * D:(h + 1) * D].reshape(TB, N, D)
        # x1[b,i,k] = sum_j att_h[i,j] * hx_h[b,k,j]; y_h already holds
        # hx_h @ att_h^T, so only a small per-batch 16x16 transpose (XLU) is left.
        x1 = jnp.swapaxes(y_h3, 1, 2).astype(cdt)            # (TB, D, N)
        a = jnp.tanh(adj * x1)                               # (TB, N, N)
        # NOTE: reference's `x2 = torch.matmul(x, x1)` is dead code -> skipped.
        head = jnp.einsum('bik,bkd->bid', a, hx_h3,
                          preferred_element_type=jnp.float32)
        heads.append(jnp.maximum(head, 0.0).reshape(TB * N, D))

    # relu(cat(heads)) == cat(relu(head_h)); the extra outer ReLU is a no-op.
    cat = jnp.concatenate(heads, axis=1)                     # (TB*N, H*D) f32

    # ---- second fused matmul: [ self.a | gate2 o self.a ] -------------------
    proj = lax.dot_general(cat.astype(cdt), aw_ref[...], (((1,), (0,)), ((), ())),
                           preferred_element_type=jnp.float32)
    hx_a = proj[:, :D]                                       # self.a(cat)
    g2x = proj[:, D:]                                        # gate2(self.a(cat))

    coeff = jax.nn.sigmoid((xg + g2x).astype(cdt)).astype(jnp.float32) + gb_ref[...]
    out = xf * coeff + hx_a * (1.0 - coeff)                  # (TB*N, D) f32
    out_ref[...] = out.astype(out_ref.dtype)


# ----------------------------------------------------------------------------
# Tiling / VMEM heuristics
# ----------------------------------------------------------------------------
def _padded_bytes(shape, dtype):
    """VMEM footprint of a block, rounded to (sublane, 128-lane) tiles."""
    dtype = jnp.dtype(dtype)
    s = tuple(int(d) for d in shape)
    if len(s) == 0:
        return dtype.itemsize
    if len(s) == 1:
        s = (1,) + s
    lanes = -(-s[-1] // 128) * 128
    sub_tile = 8 * max(1, 4 // dtype.itemsize)               # 8 for f32, 16 for bf16
    subs = -(-s[-2] // sub_tile) * sub_tile
    lead = 1
    for d in s[:-2]:
        lead *= d
    return lead * subs * lanes * dtype.itemsize


def _dual_tensorcore():
    """True for chips exposing 2 TensorCores behind one device (v7x, v4/v5p)."""
    try:
        kind = jax.devices()[0].device_kind.lower().replace(" ", "")
        return any(t in kind for t in ("v7", "7x", "v4", "v5p"))
    except Exception:
        return False


def _vmem_budget_bytes(dual_core):
    try:
        cap = int(pltpu.get_tpu_info().vmem_capacity_bytes)
    except Exception:
        cap = 128 << 20
    if dual_core:
        cap = min(cap, 64 << 20)            # v7x: 64 MiB per TensorCore
    return max(16 << 20, min(cap - (24 << 20), 100 << 20))


def _estimate_vmem(tb, N, in_dim, D, H, wc, cdt, adj_dt, out_dt):
    f32 = jnp.dtype(jnp.float32)
    use = 0
    # double-buffered streamed blocks
    use += 2 * _padded_bytes((tb, N, in_dim), cdt)           # x
    use += 2 * _padded_bytes((tb, N, N), adj_dt)             # adj
    use += 2 * _padded_bytes((tb * N, D), out_dt)            # out
    # full-spec weights (still double-buffered by the pipeline)
    use += 2 * (_padded_bytes((in_dim, wc), cdt) + _padded_bytes((1, wc), f32)
                + _padded_bytes((H * D, 2 * D), cdt) + _padded_bytes((1, D), f32))
    # major in-kernel intermediates (single copy)
    use += _padded_bytes((tb * N, wc), f32)                  # big
    use += 3 * tb * _padded_bytes((N, N), f32)               # adj upcast / x1 / a
    use += (H + 6) * _padded_bytes((tb * N, D), f32)         # heads, xf, xg, hx_a, ...
    use += 2 * _padded_bytes((tb * N, H * D), f32)           # hx_all/y_all views, cat
    return use


def _pick_tb(B, N, in_dim, D, H, wc, cdt, adj_dt, out_dt, budget, dual_core):
    divisors = [t for t in range(1, B + 1) if B % t == 0]
    fits = [t for t in divisors
            if _estimate_vmem(t, N, in_dim, D, H, wc, cdt, adj_dt, out_dt) <= budget]
    if not fits:
        return 1
    if dual_core:
        even = [t for t in fits if (B // t) % 2 == 0]
        if even:
            return max(even)     # largest tile giving an even parallel step count
    return max(fits)             # single TC: one maximal step if it fits


# ----------------------------------------------------------------------------
# Wrapper
# ----------------------------------------------------------------------------
def gatconv_forward(x, adj, params, n_head, *, compute_dtype=jnp.float32,
                    adj_stream_dtype=jnp.bfloat16):
    B, N, in_dim = x.shape
    D = params["fc_w"].shape[0]
    H = n_head
    assert N == D, "reference semantics require N == out_dim"

    cdt = jnp.dtype(compute_dtype)
    f32 = jnp.float32
    hp = lax.Precision.HIGHEST

    # --- one-time weight re-layout + algebraic folding (done accurately) ----
    # Column h*D+d of w_all is ws[h].weight[d, :]; the same head-major order is
    # used for b_all, the att block-diagonal and a_w^T (checked vs ref in main).
    w_all = jnp.transpose(params["w"], (2, 0, 1)).reshape(in_dim, H * D).astype(f32)
    b_all = params["b"].reshape(1, H * D).astype(f32)
    att_t_bd = jax.scipy.linalg.block_diag(
        *[params["att"][h].T for h in range(H)]).astype(f32)       # (H*D, H*D)
    fcwt = params["fc_w"].T.astype(f32)                            # (in_dim, D)
    g1t = params["g1_w"].T.astype(f32)
    g2t = params["g2_w"].T.astype(f32)
    a_wT = params["a_w"].T.astype(f32)                             # (H*D, D)

    w_y = jnp.matmul(w_all, att_t_bd, precision=hp)                # hx@att^T fold
    b_y = jnp.matmul(b_all, att_t_bd, precision=hp)
    w_xg = jnp.matmul(fcwt, g1t, precision=hp)                     # gate1(fc(x)) fold
    a_g2 = jnp.matmul(a_wT, g2t, precision=hp)                     # gate2(self.a) fold

    ww = jnp.concatenate([w_all, w_y, fcwt, w_xg], axis=1).astype(cdt)
    bw = jnp.concatenate([b_all, b_y, jnp.zeros((1, 2 * D), f32)], axis=1)
    aw = jnp.concatenate([a_wT, a_g2], axis=1).astype(cdt)         # (H*D, 2*D)
    gb = params["gb"].astype(f32)                                  # (1, D)
    wc = int(ww.shape[1])

    x_c = x.astype(cdt)
    # adj is a 0/1 mask here -> exact in bf16; this halves/quarters the largest
    # HBM read.  Pass adj_stream_dtype=jnp.float32 for weighted adjacency.
    adj_c = adj.astype(adj_stream_dtype)

    dual = _dual_tensorcore()
    budget = _vmem_budget_bytes(dual)
    tb = _pick_tb(B, N, in_dim, D, H, wc, cdt, jnp.dtype(adj_stream_dtype),
                  x.dtype, budget, dual)
    grid = (B // tb,)

    # Advisory cost estimate for the XLA scheduler.
    flops = (2 * B * N * in_dim * wc            # fused wide matmul
             + 2 * B * H * N * N * D            # per-head a @ hx
             + 2 * B * N * (H * D) * (2 * D))   # fused self.a / gate2 matmul
    transcendentals = B * H * N * N + B * N * D
    bytes_accessed = (x_c.size * x_c.dtype.itemsize
                      + adj_c.size * adj_c.dtype.itemsize
                      + B * N * D * x.dtype.itemsize
                      + sum(int(a.size) * a.dtype.itemsize for a in (ww, bw, aw, gb)))

    out_flat = pl.pallas_call(
        partial(gatconv_kernel, n_head=H, out_dim=D, compute_dtype=cdt),
        out_shape=jax.ShapeDtypeStruct((B * N, D), x.dtype),
        grid=grid,
        in_specs=[
            pl.BlockSpec((tb, N, in_dim), lambda g: (g, 0, 0)),    # x
            pl.BlockSpec((tb, N, N), lambda g: (g, 0, 0)),         # adj
            pl.BlockSpec(ww.shape, lambda g: (0, 0)),              # fused weights
            pl.BlockSpec(bw.shape, lambda g: (0, 0)),              # fused bias
            pl.BlockSpec(aw.shape, lambda g: (0, 0)),              # fused a/gate2
            pl.BlockSpec(gb.shape, lambda g: (0, 0)),              # gatebias
        ],
        out_specs=pl.BlockSpec((tb * N, D), lambda g: (g, 0)),
        compiler_params=pltpu.CompilerParams(
            dimension_semantics=("parallel",),
            vmem_limit_bytes=int(budget)),
        cost_estimate=pl.CostEstimate(flops=int(flops),
                                      transcendentals=int(transcendentals),
                                      bytes_accessed=int(bytes_accessed)),
    )(x_c, adj_c, ww, bw, aw, gb)
    return out_flat.reshape(B, N, D)


# ----------------------------------------------------------------------------
# Pure-JAX reference mirroring the PyTorch forward
# ----------------------------------------------------------------------------
def gatconv_ref(x, adj, p, n_head):
    heads = []
    for i in range(n_head):
        hx = x @ p["w"][i].T + p["b"][i]                          # (B, N, D)
        x1 = jnp.einsum("ij,bkj->bik", p["att"][i], hx)           # (B, D, N)
        a = jnp.tanh(adj * x1)                                    # (B, N, N)
        hx = jax.nn.relu(jnp.einsum("bij,bjk->bik", a, hx))
        heads.append(hx)
    cat = jax.nn.relu(jnp.concatenate(heads, axis=2))             # (B, N, D*H)
    hx = cat @ p["a_w"].T
    xf = x @ p["fc_w"].T
    coeff = jax.nn.sigmoid(xf @ p["g1_w"].T + hx @ p["g2_w"].T) + p["gb"]
    return xf * coeff + hx * (1.0 - coeff)


def make_params(key, in_dim, out_dim, n_head):
    ks = jax.random.split(key, 9)
    scale = 1.0 / jnp.sqrt(in_dim)
    return {
        "w": jax.random.uniform(ks[0], (n_head, out_dim, in_dim),
                                jnp.float32, -scale, scale),
        "b": jax.random.uniform(ks[1], (n_head, 1, out_dim),
                                jnp.float32, -scale, scale),
        "att": jax.random.uniform(ks[2], (n_head, out_dim, out_dim), jnp.float32),
        "a_w": jax.random.uniform(ks[3], (out_dim, out_dim * n_head),
                                  jnp.float32, -scale, scale),
        "fc_w": jax.random.uniform(ks[4], (out_dim, in_dim),
                                   jnp.float32, -scale, scale),
        "g1_w": jax.random.uniform(ks[5], (out_dim, out_dim),
                                   jnp.float32, -scale, scale),
        "g2_w": jax.random.uniform(ks[6], (out_dim, out_dim),
                                   jnp.float32, -scale, scale),
        "gb": jax.random.uniform(ks[7], (1, out_dim), jnp.float32),
    }


if __name__ == "__main__":
    B, N, in_dim, out_dim, n_head = 8, 16, 16, 16, 2   # N must equal out_dim
    key = jax.random.PRNGKey(0)
    kx, kadj, kp = jax.random.split(key, 3)

    x = jax.random.normal(kx, (B, N, in_dim), jnp.float32)
    adj = (jax.random.uniform(kadj, (B, N, N), jnp.float32) > 0.5).astype(jnp.float32)
    params = make_params(kp, in_dim, out_dim, n_head)

    ref = gatconv_ref(x, adj, params, n_head)

    # f32 path: near-exact match against the pure-JAX reference.
    out = jax.block_until_ready(gatconv_forward(x, adj, params, n_head))
    assert out.shape == (B, N, out_dim)
    assert jnp.allclose(out, ref, atol=1e-3, rtol=1e-3)

    # bf16 path (bf16 MXU operands + bf16 tanh/sigmoid, f32 accumulation):
    # looser tolerance.
    out_bf16 = jax.block_until_ready(
        gatconv_forward(x, adj, params, n_head, compute_dtype=jnp.bfloat16))
    assert out_bf16.shape == (B, N, out_dim)
    assert jnp.allclose(out_bf16, ref, atol=2.5e-1, rtol=2.5e-1)

    print("KERNEL_OK")
</pallas_src>

<mosaic_0001>
module attributes {stable_mosaic.version = 11 : i64} {
  func.func @gatconv_kernel(%arg0: i32, %arg1: memref<8x16x16xf32, #tpu.memory_space<vmem>>, %arg2: memref<8x16x16xbf16, #tpu.memory_space<vmem>>, %arg3: memref<16x96xf32, #tpu.memory_space<vmem>>, %arg4: memref<1x96xf32, #tpu.memory_space<vmem>>, %arg5: memref<32x32xf32, #tpu.memory_space<vmem>>, %arg6: memref<1x16xf32, #tpu.memory_space<vmem>>, %arg7: memref<128x16xf32, #tpu.memory_space<vmem>>) attributes {dimension_semantics = [#tpu.dimension_semantics<parallel>], iteration_bounds = array<i64: 1>, scalar_prefetch = 0 : i64, scratch_operands = 0 : i64, tpu.core_type = #tpu.core_type<tc>, window_params = [{transform_indices = @transform_0, window_bounds = array<i64: 8, 16, 16>}, {transform_indices = @transform_1, window_bounds = array<i64: 8, 16, 16>}, {pipeline_mode = #tpu.pipeline_mode<synchronous>, transform_indices = @transform_2, window_bounds = array<i64: 16, 96>}, {pipeline_mode = #tpu.pipeline_mode<synchronous>, transform_indices = @transform_3, window_bounds = array<i64: 1, 96>}, {pipeline_mode = #tpu.pipeline_mode<synchronous>, transform_indices = @transform_4, window_bounds = array<i64: 32, 32>}, {pipeline_mode = #tpu.pipeline_mode<synchronous>, transform_indices = @transform_5, window_bounds = array<i64: 1, 16>}, {transform_indices = @transform_6, window_bounds = array<i64: 128, 16>}]} {
    %c0 = arith.constant 0 : index
    %c0_0 = arith.constant 0 : index
    %c0_1 = arith.constant 0 : index
    %0 = vector.load %arg1[%c0, %c0_0, %c0_1] : memref<8x16x16xf32, #tpu.memory_space<vmem>>, vector<8x16x16xf32>
    %1 = vector.shape_cast %0 : vector<8x16x16xf32> to vector<128x16xf32>
    %c0_2 = arith.constant 0 : index
    %c0_3 = arith.constant 0 : index
    %2 = vector.load %arg3[%c0_2, %c0_3] : memref<16x96xf32, #tpu.memory_space<vmem>>, vector<16x96xf32>
    %cst = arith.constant dense<0.000000e+00> : vector<128x96xf32>
    %3 = tpu.matmul %1, %2, %cst {dimension_numbers = #tpu.dot_dimension_numbers<[1], [0], [0], [1], [0, 0, 1, 1], [], []>} : vector<128x16xf32>, vector<16x96xf32>, vector<128x96xf32> -> vector<128x96xf32>
    %c0_4 = arith.constant 0 : index
    %c0_5 = arith.constant 0 : index
    %4 = vector.load %arg4[%c0_4, %c0_5] : memref<1x96xf32, #tpu.memory_space<vmem>>, vector<1x96xf32>
    %5 = vector.broadcast %4 : vector<1x96xf32> to vector<128x96xf32>
    %6 = arith.addf %3, %5 : vector<128x96xf32>
    %7 = vector.extract_strided_slice %6 {offsets = [0, 0], sizes = [128, 32], strides = [1, 1]} : vector<128x96xf32> to vector<128x32xf32>
    %8 = vector.extract_strided_slice %6 {offsets = [0, 32], sizes = [128, 32], strides = [1, 1]} : vector<128x96xf32> to vector<128x32xf32>
    %9 = vector.extract_strided_slice %6 {offsets = [0, 64], sizes = [128, 16], strides = [1, 1]} : vector<128x96xf32> to vector<128x16xf32>
    %10 = vector.extract_strided_slice %6 {offsets = [0, 80], sizes = [128, 16], strides = [1, 1]} : vector<128x96xf32> to vector<128x16xf32>
    %c0_6 = arith.constant 0 : index
    %c0_7 = arith.constant 0 : index
    %c0_8 = arith.constant 0 : index
    %11 = vector.load %arg2[%c0_6, %c0_7, %c0_8] : memref<8x16x16xbf16, #tpu.memory_space<vmem>>, vector<8x16x16xbf16>
    %12 = arith.extf %11 : vector<8x16x16xbf16> to vector<8x16x16xf32>
    %13 = vector.extract_strided_slice %7 {offsets = [0, 0], sizes = [128, 16], strides = [1, 1]} : vector<128x32xf32> to vector<128x16xf32>
    %14 = vector.shape_cast %13 : vector<128x16xf32> to vector<8x16x16xf32>
    %15 = vector.extract_strided_slice %8 {offsets = [0, 0], sizes = [128, 16], strides = [1, 1]} : vector<128x32xf32> to vector<128x16xf32>
    %16 = vector.shape_cast %15 : vector<128x16xf32> to vector<8x16x16xf32>
    %17 = tpu.transpose %16, [0, 2, 1] : vector<8x16x16xf32> -> vector<8x16x16xf32>
    %18 = arith.mulf %12, %17 : vector<8x16x16xf32>
    %19 = math.tanh %18 : vector<8x16x16xf32>
    "tpu.trace_start"() <{level = 10 : i32, message = "bik,bkd->bid"}> : () -> ()
    %cst_9 = arith.constant dense<0.000000e+00> : vector<8x16x16xf32>
    %20 = tpu.matmul %19, %14, %cst_9 {dimension_numbers = #tpu.dot_dimension_numbers<[2], [1], [1], [2], [0, 0, 0, 1, 1, 2], [0], [0]>} : vector<8x16x16xf32>, vector<8x16x16xf32>, vector<8x16x16xf32> -> vector<8x16x16xf32>
    "tpu.trace_stop"() : () -> ()
    %cst_10 = arith.constant 0.000000e+00 : f32
    %21 = vector.broadcast %cst_10 : f32 to vector<8x16x16xf32>
    %22 = arith.maximumf %20, %21 : vector<8x16x16xf32>
    %23 = vector.shape_cast %22 : vector<8x16x16xf32> to vector<128x16xf32>
    %24 = vector.extract_strided_slice %7 {offsets = [0, 16], sizes = [128, 16], strides = [1, 1]} : vector<128x32xf32> to vector<128x16xf32>
    %25 = vector.shape_cast %24 : vector<128x16xf32> to vector<8x16x16xf32>
    %26 = vector.extract_strided_slice %8 {offsets = [0, 16], sizes = [128, 16], strides = [1, 1]} : vector<128x32xf32> to vector<128x16xf32>
    %27 = vector.shape_cast %26 : vector<128x16xf32> to vector<8x16x16xf32>
    %28 = tpu.transpose %27, [0, 2, 1] : vector<8x16x16xf32> -> vector<8x16x16xf32>
    %29 = arith.mulf %12, %28 : vector<8x16x16xf32>
    %30 = math.tanh %29 : vector<8x16x16xf32>
    "tpu.trace_start"() <{level = 10 : i32, message = "bik,bkd->bid"}> : () -> ()
    %cst_11 = arith.constant dense<0.000000e+00> : vector<8x16x16xf32>
    %31 = tpu.matmul %30, %25, %cst_11 {dimension_numbers = #tpu.dot_dimension_numbers<[2], [1], [1], [2], [0, 0, 0, 1, 1, 2], [0], [0]>} : vector<8x16x16xf32>, vector<8x16x16xf32>, vector<8x16x16xf32> -> vector<8x16x16xf32>
    "tpu.trace_stop"() : () -> ()
    %cst_12 = arith.constant 0.000000e+00 : f32
    %32 = vector.broadcast %cst_12 : f32 to vector<8x16x16xf32>
    %33 = arith.maximumf %31, %32 : vector<8x16x16xf32>
    %34 = vector.shape_cast %33 : vector<8x16x16xf32> to vector<128x16xf32>
    %35 = tpu.concatenate %23, %34 in 1 : vector<128x16xf32>, vector<128x16xf32> -> vector<128x32xf32>
    %c0_13 = arith.constant 0 : index
    %c0_14 = arith.constant 0 : index
    %36 = vector.load %arg5[%c0_13, %c0_14] : memref<32x32xf32, #tpu.memory_space<vmem>>, vector<32x32xf32>
    %cst_15 = arith.constant dense<0.000000e+00> : vector<128x32xf32>
    %37 = tpu.matmul %35, %36, %cst_15 {dimension_numbers = #tpu.dot_dimension_numbers<[1], [0], [0], [1], [0, 0, 1, 1], [], []>} : vector<128x32xf32>, vector<32x32xf32>, vector<128x32xf32> -> vector<128x32xf32>
    %38 = vector.extract_strided_slice %37 {offsets = [0, 0], sizes = [128, 16], strides = [1, 1]} : vector<128x32xf32> to vector<128x16xf32>
    %39 = vector.extract_strided_slice %37 {offsets = [0, 16], sizes = [128, 16], strides = [1, 1]} : vector<128x32xf32> to vector<128x16xf32>
    %40 = arith.addf %10, %39 : vector<128x16xf32>
    %41 = arith.negf %40 : vector<128x16xf32>
    %42 = math.exp %41 : vector<128x16xf32>
    %cst_16 = arith.constant 1.000000e+00 : f32
    %43 = vector.broadcast %cst_16 : f32 to vector<128x16xf32>
    %44 = arith.addf %43, %42 : vector<128x16xf32>
    %45 = arith.divf %43, %44 : vector<128x16xf32>
    %c0_17 = arith.constant 0 : index
    %c0_18 = arith.constant 0 : index
    %46 = vector.load %arg6[%c0_17, %c0_18] : memref<1x16xf32, #tpu.memory_space<vmem>>, vector<1x16xf32>
    %47 = vector.broadcast %46 : vector<1x16xf32> to vector<128x16xf32>
    %48 = arith.addf %45, %47 : vector<128x16xf32>
    %49 = arith.mulf %9, %48 : vector<128x16xf32>
    %cst_19 = arith.constant 1.000000e+00 : f32
    %50 = vector.broadcast %cst_19 : f32 to vector<128x16xf32>
    %51 = arith.subf %50, %48 : vector<128x16xf32>
    %52 = arith.mulf %38, %51 : vector<128x16xf32>
    %53 = arith.addf %49, %52 : vector<128x16xf32>
    %c0_20 = arith.constant 0 : index
    %c0_21 = arith.constant 0 : index
    %54 = vector.load %arg7[%c0_20, %c0_21] : memref<128x16xf32, #tpu.memory_space<vmem>>, vector<128x16xf32>
    tpu.vector_store %arg7[%c0_20, %c0_21], %53 {strides = array<i32>} : memref<128x16xf32, #tpu.memory_space<vmem>>, vector<128x16xf32>,
    return
  }
  func.func @transform_0(%arg0: i32) -> (i32, i32, i32) {
    %c0_i32 = arith.constant 0 : i32
    %c0_i32_0 = arith.constant 0 : i32
    %c0_i32_1 = arith.constant 0 : i32
    return %arg0, %c0_i32, %c0_i32_0 : i32, i32, i32
  }
  func.func @transform_1(%arg0: i32) -> (i32, i32, i32) {
    %c0_i32 = arith.constant 0 : i32
    %c0_i32_0 = arith.constant 0 : i32
    %c0_i32_1 = arith.constant 0 : i32
    return %arg0, %c0_i32, %c0_i32_0 : i32, i32, i32
  }
  func.func @transform_2(%arg0: i32) -> (i32, i32) {
    %c0_i32 = arith.constant 0 : i32
    %c0_i32_0 = arith.constant 0 : i32
    %c0_i32_1 = arith.constant 0 : i32
    return %c0_i32, %c0_i32_0 : i32, i32
  }
  func.func @transform_3(%arg0: i32) -> (i32, i32) {
    %c0_i32 = arith.constant 0 : i32
    %c0_i32_0 = arith.constant 0 : i32
    %c0_i32_1 = arith.constant 0 : i32
    return %c0_i32, %c0_i32_0 : i32, i32
  }
  func.func @transform_4(%arg0: i32) -> (i32, i32) {
    %c0_i32 = arith.constant 0 : i32
    %c0_i32_0 = arith.constant 0 : i32
    %c0_i32_1 = arith.constant 0 : i32
    return %c0_i32, %c0_i32_0 : i32, i32
  }
  func.func @transform_5(%arg0: i32) -> (i32, i32) {
    %c0_i32 = arith.constant 0 : i32
    %c0_i32_0 = arith.constant 0 : i32
    %c0_i32_1 = arith.constant 0 : i32
    return %c0_i32, %c0_i32_0 : i32, i32
  }
  func.func @transform_6(%arg0: i32) -> (i32, i32) {
    %c0_i32 = arith.constant 0 : i32
    %c0_i32_0 = arith.constant 0 : i32
    return %arg0, %c0_i32 : i32, i32
  }
}

</mosaic_0001>

<bundles_post_ra>
// kernel: tpu_custom_call.1
= control target key start
LH: loop header
LB: loop body
LE: loop exit
PB: predicated region body
PF: predicated region fallthrough
CT: control target
= control target key end

     0   :  { %11 = vsyncpa [#allocation3], 0  ;;  %s4874_s0 = inlined_call_operand.hbm [shape: f32[8,16,16], index: 0, kind: input, shape index: {}]   ;;  %s4875_s1 = inlined_call_operand.hbm [shape: bf16[8,16,16], index: 1, kind: input, shape index: {}]   ;;  %s4876_s2 = inlined_call_operand.hbm [shape: f32[16,96], index: 2, kind: input, shape index: {}]   ;;  %s4877_s3 = inlined_call_operand.hbm [shape: f32[1,96], index: 3, kind: input, shape index: {}]   ;;  %s4878_s4 = inlined_call_operand.hbm [shape: f32[32,32], index: 4, kind: input, shape index: {}]   ;;  %s4879_s5 = inlined_call_operand.hbm [shape: f32[1,16], index: 5, kind: input, shape index: {}]   ;;  %s4880_s6 = inlined_call_operand.hbm [shape: f32[128,16], index: 6, kind: output, shape index: {}]  }
   0x1   :  { %12 = vsyncpa [#allocation6], 0 }
   0x2   :  { %13 = vsyncpa [#allocation9], 0 }
   0x3   :  { %14 = vsyncpa [#allocation12], 0 }
   0x4   :  { %15 = vsyncpa [#allocation4], 0  ;;  %s4074_s21 = smov [#allocation5]   ;;  %s3910_s25 = scalar_lea.hbm %s4875_s1, 1024 }
   0x5   :  { %s33_s22 = sshll.u32 %s4074_s21, 4  ;;  %p3911_p0 = scmp.ne.s32.totalorder %s4875_s1, %s3910_s25  ;;  %s34_s22 = int_to_ptr.vmem [resolvable:$true] %s33_s22 }
   0x6   :  { %p3914_p1 = scmp.lt.u32.totalorder %s3910_s25, %s4875_s1 }
   0x8   :  { %p3916_p2 = pnand %p3914_p1, %p3911_p0 }
   0xa   :  { %3919 = shalt.err (!%p3916_p2)
}
   0xb   :  { %s3920_s30 = scalar_lea.vmem %s34_s22, 1024  ;;  %p3925_p4 = scmp.lt.s32.totalorder %s34_s22, %s34_s22 }
   0xc   :  { %p3921_p3 = scmp.ne.s32.totalorder %s34_s22, %s3920_s30  ;;  %p3926_p5 = scmp.lt.s32.totalorder %s3920_s30, %s3920_s30 }
   0xe   :  { %p3927_p6 = por %p3926_p5, %p3925_p4 }
  0x10   :  { %p3928_p7 = pnand %p3927_p6, %p3921_p3 }
  0x12   :  { %3931 = shalt.err (!%p3928_p7)
}
  0x13   :  { %s4075_s7 = smov 64   ;;  %s4076_s8 = smov 4  }
  0x14   :  { %39 = dma.hbm_to_vmem [thread:$0]  %s4875_s1, 1024, %s34_s22, [#allocation6], %s4075_s7, %s4075_s7, %s4076_s8  }
  0x15   :  { %s4077_s11 = smov [#allocation8]   ;;  %s4078_s13 = smov [#allocation2]  }
  0x16   :  { %s58_s12 = sshll.u32 %s4077_s11, 4  ;;  %s21_s14 = sshll.u32 %s4078_s13, 4  ;;  %s59_s12 = int_to_ptr.vmem [resolvable:$true] %s58_s12  ;;  %s22_s14 = int_to_ptr.vmem [resolvable:$true] %s21_s14 }
  0x17   :  { %s3932_s17 = scalar_lea.hbm %s4877_s3, 16 }
  0x18   :  { %p3933_p8 = scmp.ne.s32.totalorder %s4877_s3, %s3932_s17  ;;  %p3936_p9 = scmp.lt.u32.totalorder %s3932_s17, %s4877_s3 }
  0x1a   :  { %p3938_p10 = pnand %p3936_p9, %p3933_p8 }
  0x1c   :  { %3941 = shalt.err (!%p3938_p10)
}
  0x1d   :  { %s3942_s1 = scalar_lea.vmem %s59_s12, 16  ;;  %s3946_s22 = scalar_lea.vmem %s59_s12, 32 }
  0x1e   :  { %p3943_p11 = scmp.ne.s32.totalorder %s59_s12, %s3942_s1  ;;  %p3947_p12 = scmp.lt.s32.totalorder %s59_s12, %s59_s12 }
  0x1f   :  { %p3948_p13 = scmp.lt.s32.totalorder %s3946_s22, %s3942_s1 }
  0x21   :  { %p3949_p0 = por %p3948_p13, %p3947_p12 }
  0x23   :  { %p3950_p1 = pnand %p3949_p0, %p3943_p11 }
  0x25   :  { %3953 = shalt.err (!%p3950_p1)
}
  0x26   :  { %61 = dma.hbm_to_vmem [thread:$0]  %s4877_s3, 16, %s59_s12, [#allocation9]  }
  0x27   :  { %s3954_s27 = scalar_lea.hbm %s4874_s0, 2048 }
  0x28   :  { %p3955_p2 = scmp.ne.s32.totalorder %s4874_s0, %s3954_s27  ;;  %p3958_p3 = scmp.lt.u32.totalorder %s3954_s27, %s4874_s0 }
  0x2a   :  { %p3960_p4 = pnand %p3958_p3, %p3955_p2 }
  0x2c   :  { %3963 = shalt.err (!%p3960_p4)
}
  0x2d   :  { %s3964_s9 = scalar_lea.vmem %s22_s14, 2048  ;;  %p3969_p6 = scmp.lt.s32.totalorder %s22_s14, %s22_s14 }
  0x2e   :  { %p3965_p5 = scmp.ne.s32.totalorder %s22_s14, %s3964_s9  ;;  %p3970_p7 = scmp.lt.s32.totalorder %s3964_s9, %s3964_s9 }
  0x30   :  { %p3971_p8 = por %p3970_p7, %p3969_p6 }
  0x32   :  { %p3972_p9 = pnand %p3971_p8, %p3965_p5 }
  0x34   :  { %3975 = shalt.err (!%p3972_p9)
}
  0x35   :  { %s4079_s3 = smov 128   ;;  %s4080_s10 = smov 8  }
  0x36   :  { %27 = dma.hbm_to_vmem [thread:$0]  %s4874_s0, 2048, %s22_s14, [#allocation3], %s4079_s3, %s4079_s3, %s4080_s10  }
  0x37   :  { %s4081_s13 = smov [#allocation7]   ;;  %s4082_s16 = smov [#allocation10]  }
  0x38   :  { %s45_s15 = sshll.u32 %s4081_s13, 4  ;;  %s67_s17 = sshll.u32 %s4082_s16, 4  ;;  %s46_s15 = int_to_ptr.vmem [resolvable:$true] %s45_s15  ;;  %s68_s17 = int_to_ptr.vmem [resolvable:$true] %s67_s17 }
  0x39   :  { %s3976_s20 = scalar_lea.hbm %s4876_s2, 256 }
  0x3a   :  { %p3977_p10 = scmp.ne.s32.totalorder %s4876_s2, %s3976_s20  ;;  %p3980_p11 = scmp.lt.u32.totalorder %s3976_s20, %s4876_s2 }
  0x3c   :  { %p3982_p12 = pnand %p3980_p11, %p3977_p10 }
  0x3e   :  { %3985 = shalt.err (!%p3982_p12)
}
  0x3f   :  { %s3986_s0 = scalar_lea.vmem %s46_s15, 256  ;;  %p3991_p0 = scmp.lt.s32.totalorder %s46_s15, %s46_s15 }
  0x40   :  { %p3987_p13 = scmp.ne.s32.totalorder %s46_s15, %s3986_s0  ;;  %p3992_p1 = scmp.lt.s32.totalorder %s3986_s0, %s3986_s0 }
  0x42   :  { %p3993_p2 = por %p3992_p1, %p3991_p0 }
  0x44   :  { %p3994_p3 = pnand %p3993_p2, %p3987_p13 }
  0x46   :  { %3997 = shalt.err (!%p3994_p3)
}
  0x47   :  { %51 = dma.hbm_to_vmem [thread:$0]  %s4876_s2, 256, %s46_s15, [#allocation6], %s4079_s3, %s4079_s3, %s4080_s10  }
  0x48   :  { %s3998_s27 = scalar_lea.hbm %s4878_s4, 512 }
  0x49   :  { %p3999_p4 = scmp.ne.s32.totalorder %s4878_s4, %s3998_s27  ;;  %p4002_p5 = scmp.lt.u32.totalorder %s3998_s27, %s4878_s4 }
  0x4b   :  { %p4004_p6 = pnand %p4002_p5, %p3999_p4 }
  0x4d   :  { %4007 = shalt.err (!%p4004_p6)
}
  0x4e   :  { %s4008_s9 = scalar_lea.vmem %s68_s17, 512  ;;  %p4013_p8 = scmp.lt.s32.totalorder %s68_s17, %s68_s17 }
  0x4f   :  { %p4009_p7 = scmp.ne.s32.totalorder %s68_s17, %s4008_s9  ;;  %p4014_p9 = scmp.lt.s32.totalorder %s4008_s9, %s4008_s9 }
  0x51   :  { %p4015_p10 = por %p4014_p9, %p4013_p8 }
  0x53   :  { %p4016_p11 = pnand %p4015_p10, %p4009_p7 }
  0x55   :  { %4019 = shalt.err (!%p4016_p11)
}
  0x56   :  { %73 = dma.hbm_to_vmem [thread:$0]  %s4878_s4, 512, %s68_s17, [#allocation9], %s4079_s3, %s4079_s3, %s4080_s10  }
  0x57   :  { %s4083_s12 = smov [#allocation11]   ;;  %s4020_s18 = scalar_lea.hbm %s4879_s5, 16 }
  0x58   :  { %s80_s13 = sshll.u32 %s4083_s12, 4  ;;  %p4021_p12 = scmp.ne.s32.totalorder %s4879_s5, %s4020_s18  ;;  %s81_s13 = int_to_ptr.vmem [resolvable:$true] %s80_s13 }
  0x59   :  { %p4024_p13 = scmp.lt.u32.totalorder %s4020_s18, %s4879_s5 }
  0x5b   :  { %p4026_p0 = pnand %p4024_p13, %p4021_p12 }
  0x5d   :  { %4029 = shalt.err (!%p4026_p0)
}
  0x5e   :  { %s4030_s22 = scalar_lea.vmem %s81_s13, 16  ;;  %s4034_s4 = scalar_lea.vmem %s81_s13, 32 }
  0x5f   :  { %p4031_p1 = scmp.ne.s32.totalorder %s81_s13, %s4030_s22  ;;  %p4035_p2 = scmp.lt.s32.totalorder %s81_s13, %s81_s13 }
  0x60   :  { %p4036_p3 = scmp.lt.s32.totalorder %s4034_s4, %s4030_s22 }
  0x62   :  { %p4037_p4 = por %p4036_p3, %p4035_p2 }
  0x64   :  { %p4038_p5 = pnand %p4037_p4, %p4031_p1 }
  0x66   :  { %4041 = shalt.err (!%p4038_p5)
}
  0x67   :  { %83 = dma.hbm_to_vmem [thread:$0]  %s4879_s5, 16, %s81_s13, [#allocation12]  }
  0x68   :  { %4064 = dma.done.wait [#allocation3], 2048  }
  0x69   :  { %4065 = vsyncadd [#allocation3], 4294965248 }
  0x6a   :  { %4066 = dma.done.wait [#allocation6], 1280  }
  0x6b   :  { %4067 = vsyncadd [#allocation6], 4294966016 }
  0x6c   :  { %4068 = dma.done.wait [#allocation9], 528  }
  0x6d   :  { %4069 = vsyncadd [#allocation9], 4294966768 }
  0x6e   :  { %4070 = dma.done.wait [#allocation12], 16  }
  0x6f   :  { %4071 = vsyncadd [#allocation12], 4294967280  ;;  %vm127_vm0 = vcmask 130048   ;;  %v118_v0 = vld [vmem:[#allocation7] sm:$0xff]  ;;  %v119_v1 = vld [vmem:[#allocation7 + $0x8] sm:$0xff]  ;;  %s4084_s5 = smov 96  }
  0x70   :  { %v102_v2 = vld [vmem:[#allocation2] sm:$0xff]  ;;  %v3647_v3 = vpack.c.bf16 %v119_v1, %v118_v0  ;;  %v103_v5 = vld [vmem:[#allocation2 + $0x8] sm:$0xff]  ;;  %v112_v7 = vld [vmem:[#allocation2 + $0x50] sm:$0xff]  ;;  %s4085_s0 = smov 80   ;;  %s4086_s14 = smov 112   ;;  %vm2501_vm1 = vcmask 261120  }
  0x71   :  { %3479 = vmatprep.mubr.msk.f32.mxu0 %vm127_vm0, %v102_v2  ;;  %v110_v4 = vld [vmem:[#allocation2 + $0x40] sm:$0xff]  ;;  %v111_v6 = vld [vmem:[#allocation2 + $0x48] sm:$0xff]  ;;  %v104_v8 = vld [vmem:[#allocation2 + $0x10] sm:$0xff]  ;;  %s4087_s24 = smov 16   ;;  %s4088_s25 = smov 48  }
  0x72   :  { %3491 = vmatprep.mubr.msk.f32.mxu1 %vm127_vm0, %v110_v4  ;;  %3648 = vmatprep.subr.bf16.mxu0 %v3647_v3  ;;  %v113_v9 = vld [vmem:[#allocation2 + $0x58] sm:$0xff]  ;;  %v106_v11 = vld [vmem:[#allocation2 + $0x20] sm:$0xff]  ;;  %v107_v13 = vld [vmem:[#allocation2 + $0x28] sm:$0xff] }
  0x73   :  { %3723 = vmatprep.subr.bf16.mxu1 %v3647_v3  ;;  %3650 = vmatpush3.bf16.msra.mxu0 %v3647_v3  ;;  %v105_v10 = vld [vmem:[#allocation2 + $0x18] sm:$0xff]  ;;  %v114_v12 = vld [vmem:[#allocation2 + $0x60] sm:$0xff]  ;;  %v115_v14 = vld [vmem:[#allocation2 + $0x68] sm:$0xff] }
  0x74   :  { %3724 = vmatpush3.bf16.msra.mxu1 %v3647_v3  ;;  %v116_v15 = vld [vmem:[#allocation2 + $0x70] sm:$0xff]  ;;  %v117_v17 = vld [vmem:[#allocation2 + $0x78] sm:$0xff] }
  0x75   :  { %v108_v16 = vld [vmem:[#allocation2 + $0x30] sm:$0xff]  ;;  %v109_v18 = vld [vmem:[#allocation2 + $0x38] sm:$0xff] }
  0x76   :  { %3480 = vmatmul.mubr.msk.f32.vlgmr.msra.gmra.mrb[0].mxu0 %vm127_vm0, %v103_v5  ;;  %v4224_v19 = vld [vmem:[#allocation8] ss:$0 sm:$0xff] }
  0x77   :  { %3492 = vmatmul.mubr.msk.f32.vlgmr.msra.gmra.mrb[0].mxu1 %vm127_vm0, %v111_v6  ;;  %3482 = vmatprep.mubr.msk.f32.mxu0 %vm127_vm0, %v104_v8 }
  0x78   :  { %3494 = vmatprep.mubr.msk.f32.mxu1 %vm127_vm0, %v112_v7 }
  0x7a   :  { %3483 = vmatmul.mubr.msk.f32.gmra.mrb[2].mxu0 %vm127_vm0, %v105_v10 }
  0x7b   :  { %3495 = vmatmul.mubr.msk.f32.gmra.mrb[2].mxu1 %vm127_vm0, %v113_v9  ;;  %3485 = vmatprep.mubr.msk.f32.mxu0 %vm127_vm0, %v106_v11 }
  0x7c   :  { %3497 = vmatprep.mubr.msk.f32.mxu1 %vm127_vm0, %v114_v12 }
  0x7e   :  { %3486 = vmatmul.mubr.msk.f32.gmra.mrb[4].mxu0 %vm127_vm0, %v107_v13 }
  0x7f   :  { %3498 = vmatmul.mubr.msk.f32.gmra.mrb[4].mxu1 %vm127_vm0, %v115_v14  ;;  %3488 = vmatprep.mubr.msk.f32.mxu0 %vm127_vm0, %v108_v16 }
  0x80   :  { %3500 = vmatprep.mubr.msk.f32.mxu1 %vm127_vm0, %v116_v15 }
  0x82   :  { %3489 = vmatmul.mubr.msk.f32.gmra.mrb[6].mxu0 %vm127_vm0, %v109_v18 }
  0x83   :  { %3501 = vmatmul.mubr.msk.f32.gmra.mrb[6].mxu1 %vm127_vm0, %v117_v17 }
 0x149   :  { %v3481_v20 = vpop.f32.mrb[0].mxu0 }
 0x14a   :  { %v3493_v21 = vpop.f32.mrb[0].mxu1  ;;  %v4227_v22 = vadd.f32 %v3481_v20, %v4224_v19  ;;  %v242_v25 = vpop.f32.mrb[1].mxu0 }
 0x14b   :  { %v4230_v23 = vadd.f32 %v3493_v21, %v4224_v19  ;;  %v282_v24 = vpop.f32.mrb[1].mxu1  ;;  %v4233_v26 = vadd.f32 %v4224_v19, %v242_v25 }
 0x14c   :  { %371 = vrot.lane.b32.xlu0 %v4227_v22, %s4084_s5  ;;  %v4256_v37 = vadd.f32 %v4224_v19, %v282_v24 }
 0x14d   :  { %387 = vrot.lane.b32.xlu1 %v4230_v23, %s4084_s5  ;;  %v3651_v27 = vpack.c.bf16 %v4227_v22, %v4233_v26  ;;  %v3484_v29 = vpop.f32.mrb[2].mxu0  ;;  %v3742_v47 = vpack.i.bf16 %v4227_v22, %v4233_v26 }
 0x14e   :  { %v3496_v28 = vpop.f32.mrb[2].mxu1  ;;  %v4242_v31 = vadd.f32 %v3484_v29, %v4224_v19  ;;  %v252_v32 = vpop.f32.mrb[3].mxu0  ;;  %v3747_v48 = vpack.i.bf16 %v4230_v23, %v4256_v37 }
 0x14f   :  { %v292_v30 = vpop.f32.mrb[3].mxu1  ;;  %3652 = vmatprep.subr.bf16.mxu1 %v3651_v27  ;;  %v4245_v33 = vadd.f32 %v4224_v19, %v252_v32  ;;  %v4287_v49 = vadd.f32 %v3496_v28, %v4224_v19 }
 0x150   :  { %369 = vrot.lane.b32.xlu0 %v4233_v26, %s4084_s5  ;;  %3654 = vmatpush3.bf16.msra.mxu1 %v3651_v27  ;;  %v4274_v46 = vadd.f32 %v4224_v19, %v292_v30 }
 0x151   :  { %1371 = vrot.lane.b32.xlu1 %v4227_v22, %s4085_s0  ;;  %v4253_v34 = vpack.c.bf16 %v4242_v31, %v4245_v33  ;;  %v3487_v35 = vpop.f32.mrb[4].mxu0  ;;  %v3752_v50 = vpack.i.bf16 %v4242_v31, %v4245_v33 }
 0x152   :  { %v3499_v36 = vpop.f32.mrb[4].mxu1  ;;  %v262_v38 = vpop.f32.mrb[5].mxu0  ;;  %v4313_v53 = vadd.f32 %v3487_v35, %v4224_v19  ;;  %v3757_v54 = vpack.i.bf16 %v4287_v49, %v4274_v46 }
 0x153   :  { %v302_v39 = vpop.f32.mrb[5].mxu1  ;;  %3656 = vmatprep.subr.bf16.mxu1 %v4253_v34  ;;  %v4299_v51 = vadd.f32 %v4224_v19, %v262_v38  ;;  %v4322_v55 = vadd.f32 %v3499_v36, %v4224_v19 }
 0x154   :  { %385 = vrot.lane.b32.xlu0 %v4256_v37, %s4084_s5  ;;  %v4306_v52 = vadd.f32 %v4224_v19, %v302_v39 }
 0x155   :  { %1387 = vrot.lane.b32.xlu1 %v4230_v23, %s4085_s0  ;;  %v3490_v41 = vpop.f32.mrb[6].mxu0  ;;  %v3762_v56 = vpack.i.bf16 %v4313_v53, %v4299_v51 }
 0x156   :  { %v3502_v40 = vpop.f32.mrb[6].mxu1  ;;  %v4264_v42 = vadd.f32 %v3490_v41, %v4224_v19  ;;  %v272_v43 = vpop.f32.mrb[7].mxu0  ;;  %v3767_v57 = vpack.i.bf16 %v4322_v55, %v4306_v52 }
 0x157   :  { %v312_v44 = vpop.f32.mrb[7].mxu1  ;;  %v4338_v58 = vadd.f32 %v3502_v40, %v4224_v19  ;;  %v4345_v59 = vadd.f32 %v4224_v19, %v272_v43 }
 0x158   :  { %v4267_v45 = vadd.f32 %v4224_v19, %v312_v44  ;;  %1385 = vrot.lane.b32.xlu0 %v4256_v37, %s4085_s0 }
 0x159   :  { %1369 = vrot.lane.b32.xlu1 %v4233_v26, %s4085_s0  ;;  %v3772_v60 = vpack.i.bf16 %v4264_v42, %v4345_v59 }
 0x15c   :  { %389 = vrot.lane.b32.xlu0 %v4274_v46, %s4084_s5 }
 0x15d   :  { %3743 = vrot.lane.b32.xlu1 %v3742_v47, %s4086_s14  ;;  %v3777_v47 = vpack.i.bf16 %v4338_v58, %v4267_v45 }
 0x160   :  { %1373 = vrot.lane.b32.xlu0 %v4245_v33, %s4085_s0 }
 0x161   :  { %3748 = vrot.lane.b32.xlu1 %v3747_v48, %s4086_s14 }
 0x164   :  { %1389 = vrot.lane.b32.xlu0 %v4274_v46, %s4085_s0 }
 0x165   :  { %375 = vrot.lane.b32.xlu1 %v4242_v31, %s4084_s5 }
 0x168   :  { %3753 = vrot.lane.b32.xlu0 %v3752_v50, %s4086_s14 }
 0x169   :  { %391 = vrot.lane.b32.xlu1 %v4287_v49, %s4084_s5 }
 0x16c   :  { %377 = vrot.lane.b32.xlu0 %v4299_v51, %s4084_s5 }
 0x16d   :  { %1375 = vrot.lane.b32.xlu1 %v4242_v31, %s4085_s0 }
 0x170   :  { %393 = vrot.lane.b32.xlu0 %v4306_v52, %s4084_s5 }
 0x171   :  { %1391 = vrot.lane.b32.xlu1 %v4287_v49, %s4085_s0 }
 0x174   :  { %1377 = vrot.lane.b32.xlu0 %v4299_v51, %s4085_s0 }
 0x175   :  { %373 = vrot.lane.b32.xlu1 %v4245_v33, %s4084_s5 }
 0x178   :  { %1393 = vrot.lane.b32.xlu0 %v4306_v52, %s4085_s0 }
 0x179   :  { %3758 = vrot.lane.b32.xlu1 %v3757_v54, %s4086_s14 }
 0x17c   :  { %3763 = vrot.lane.b32.xlu0 %v3762_v56, %s4086_s14 }
 0x17d   :  { %379 = vrot.lane.b32.xlu1 %v4313_v53, %s4084_s5 }
 0x180   :  { %3768 = vrot.lane.b32.xlu0 %v3767_v57, %s4086_s14  ;;  %v3335_v57 = vld [vmem:[#allocation5] sm:$0xff]  }
 0x181   :  { %395 = vrot.lane.b32.xlu1 %v4322_v55, %s4084_s5 }
 0x184   :  { %399 = vrot.lane.b32.xlu0 %v4338_v58, %s4084_s5 }
 0x185   :  { %1379 = vrot.lane.b32.xlu1 %v4313_v53, %s4085_s0 }
 0x188   :  { %381 = vrot.lane.b32.xlu0 %v4345_v59, %s4084_s5 }
 0x189   :  { %1395 = vrot.lane.b32.xlu1 %v4322_v55, %s4085_s0 }
 0x18c   :  { %397 = vrot.lane.b32.xlu0 %v4267_v45, %s4084_s5 }
 0x18d   :  { %383 = vrot.lane.b32.xlu1 %v4264_v42, %s4084_s5 }
 0x190   :  { %1381 = vrot.lane.b32.xlu0 %v4345_v59, %s4085_s0 }
 0x191   :  { %1383 = vrot.lane.b32.xlu1 %v4264_v42, %s4085_s0 }
 0x194   :  { %1397 = vrot.lane.b32.xlu0 %v4267_v45, %s4085_s0 }
 0x195   :  { %1399 = vrot.lane.b32.xlu1 %v4338_v58, %s4085_s0 }
 0x199   :  { %3773 = vrot.lane.b32.xlu1 %v3772_v60, %s4086_s14  ;;  %v3336_v60 = vunpack.c.l.bf16 %v3335_v57 }
 0x1be   :  { %v372_v62 = vpop.permute.xlu0 %371 }
 0x1bf   :  { %v388_v61 = vpop.permute.xlu1 %387 }
 0x1c2   :  { %v370_v0 = vpop.permute.xlu0 %369 }
 0x1c3   :  { %v1372_v63 = vpop.permute.xlu1 %1371  ;;  %417 = vxpose.xlu0.b32.start [1/2] (short) (narrow) %v370_v0, 16 }
 0x1c6   :  { %v386_v2 = vpop.permute.xlu0 %385 }
 0x1c7   :  { %v4366_v1 = vpop.permute.xlu1 %1387  ;;  %418 = vxpose.xlu0.b32.end [2/2] (short) (narrow) %v372_v62, 16 }
 0x1ca   :  { %v4368_v4 = vpop.permute.xlu0 %1385 }
 0x1cb   :  { %v1370_v3 = vpop.permute.xlu1 %1369  ;;  %545 = vxpose.xlu0.b32.start [1/2] (short) (narrow) %v386_v2, 16 }
 0x1ce   :  { %v390_v6 = vpop.permute.xlu0 %389 }
 0x1cf   :  { %v3744_v5 = vpop.permute.xlu1 %3743  ;;  %546 = vxpose.xlu0.b32.end [2/2] (short) (narrow) %v388_v61, 16 }
 0x1d0   :  { %v3746_v7 = vunpack.i.h.bf16 %v3744_v5  ;;  %v3745_v8 = vunpack.i.l.bf16 %v3744_v5 }
 0x1d2   :  { %v3683_v9 = vpack.c.bf16 %v3746_v7, %v3745_v8  ;;  %v1374_v11 = vpop.permute.xlu0 %1373 }
 0x1d3   :  { %v4370_v10 = vpop.permute.xlu1 %3748  ;;  %1417 = vxpose.xlu0.b32.start [1/2] (short) (narrow) %v1370_v3, 16 }
 0x1d4   :  { %3684 = vmatprep.subr.bf16.mxu0 %v3683_v9 }
 0x1d5   :  { %3686 = vmatpush3.bf16.msra.mxu0 %v3683_v9 }
 0x1d6   :  { %v1390_v13 = vpop.permute.xlu0 %1389 }
 0x1d7   :  { %v376_v12 = vpop.permute.xlu1 %375  ;;  %1418 = vxpose.xlu0.b32.end [2/2] (short) (narrow) %v1372_v63, 16  ;;  %v3337_v63 = vunpack.c.h.bf16 %v3335_v57  ;;  %v4430_v57 = vld [vmem:[#allocation5 + $0x28] sm:$0xff]  }
 0x1da   :  { %v4372_v15 = vpop.permute.xlu0 %3753 }
 0x1db   :  { %v392_v14 = vpop.permute.xlu1 %391 }
 0x1de   :  { %v378_v17 = vpop.permute.xlu0 %377 }
 0x1df   :  { %v1376_v16 = vpop.permute.xlu1 %1375  ;;  %481 = vxpose.xlu0.b32.start [1/2] (short) (narrow) %v378_v17, 16 }
 0x1e2   :  { %v394_v19 = vpop.permute.xlu0 %393 }
 0x1e3   :  { %v1392_v18 = vpop.permute.xlu1 %1391 }
 0x1e6   :  { %v1378_v21 = vpop.permute.xlu0 %1377 }
 0x1e7   :  { %v374_v20 = vpop.permute.xlu1 %373 }
 0x1e8   :  { %449 = vxpose.xlu1.b32.start [1/2] (short) (narrow) %v374_v20, 16  ;;  %v4406_v20 = vld [vmem:[#allocation5 + $0x10] sm:$0xff]  }
 0x1ea   :  { %v1394_v25 = vpop.permute.xlu0 %1393 }
 0x1eb   :  { %v4374_v24 = vpop.permute.xlu1 %3758 }
 0x1ec   :  { %450 = vxpose.xlu1.b32.end [2/2] (short) (narrow) %v376_v12, 16 }
 0x1ee   :  { %v3764_v28 = vpop.permute.xlu0 %3763 }
 0x1ef   :  { %v380_v27 = vpop.permute.xlu1 %379  ;;  %v3766_v29 = vunpack.i.h.bf16 %v3764_v28  ;;  %v3765_v30 = vunpack.i.l.bf16 %v3764_v28 }
 0x1f0   :  { %577 = vxpose.xlu1.b32.start [1/2] (short) (narrow) %v390_v6, 16  ;;  %482 = vxpose.xlu0.b32.end [2/2] (short) (narrow) %v380_v27, 16  ;;  %v3344_v27 = vunpack.c.l.bf16 %v4406_v20 }
 0x1f1   :  { %v4376_v32 = vpack.c.bf16 %v3766_v29, %v3765_v30 }
 0x1f2   :  { %v4378_v36 = vpop.permute.xlu0 %3768 }
 0x1f3   :  { %v396_v35 = vpop.permute.xlu1 %395  ;;  %3692 = vmatprep.subr.bf16.mxu0 %v4376_v32 }
 0x1f4   :  { %578 = vxpose.xlu1.b32.end [2/2] (short) (narrow) %v392_v14, 16  ;;  %609 = vxpose.xlu0.b32.start [1/2] (short) (narrow) %v394_v19, 16  ;;  %v3750_v14 = vunpack.i.l.bf16 %v4370_v10 }
 0x1f6   :  { %v400_v39 = vpop.permute.xlu0 %399 }
 0x1f7   :  { %v1380_v38 = vpop.permute.xlu1 %1379 }
 0x1f8   :  { %610 = vxpose.xlu0.b32.end [2/2] (short) (narrow) %v396_v35, 16 }
 0x1fa   :  { %v382_v41 = vpop.permute.xlu0 %381 }
 0x1fb   :  { %v1396_v40 = vpop.permute.xlu1 %1395 }
 0x1fc   :  { %513 = vxpose.xlu0.b32.start [1/2] (short) (narrow) %v382_v41, 16 }
 0x1fe   :  { %v398_v44 = vpop.permute.xlu0 %397 }
 0x1ff   :  { %v384_v43 = vpop.permute.xlu1 %383 }
 0x200   :  { %514 = vxpose.xlu0.b32.end [2/2] (short) (narrow) %v384_v43, 16  ;;  %v4422_v43 = vld [vmem:[#allocation5 + $0x18] sm:$0xff]  }
 0x202   :  { %v1382_v48 = vpop.permute.xlu0 %1381 }
 0x203   :  { %v1384_v50 = vpop.permute.xlu1 %1383 }
 0x204   :  { %1449 = vxpose.xlu0.b32.start [1/2] (short) (narrow) %v1374_v11, 16 }
 0x206   :  { %v1398_v54 = vpop.permute.xlu0 %1397 }
 0x207   :  { %v1400_v56 = vpop.permute.xlu1 %1399 }
 0x208   :  { %1450 = vxpose.xlu0.b32.end [2/2] (short) (narrow) %v1376_v16, 16  ;;  %v4398_v16 = vld [vmem:[#allocation5 + $0x8] sm:$0xff]  }
 0x209   :  { %v3340_v19 = vunpack.c.l.bf16 %v4398_v16 }
 0x20b   :  { %v4400_v17 = vpop.permute.xlu1 %3773 }
 0x20c   :  { %641 = vxpose.xlu0.b32.start [1/2] (short) (narrow) %v398_v44, 16 }
 0x210   :  { %642 = vxpose.xlu0.b32.end [2/2] (short) (narrow) %v400_v39, 16 }
 0x212   :  { %3778 = vrot.lane.b32.xlu1 %v3777_v47, %s4086_s14 }
 0x214   :  { %1577 = vxpose.xlu0.b32.start [1/2] (short) (narrow) %v1390_v13, 16  ;;  %v3751_v13 = vunpack.i.h.bf16 %v4370_v10 }
 0x218   :  { %1578 = vxpose.xlu0.b32.end [2/2] (short) (narrow) %v1392_v18, 16 }
 0x21c   :  { %1513 = vxpose.xlu0.b32.start [1/2] (short) (narrow) %v1382_v48, 16  ;;  %v4424_v48 = vld [vmem:[#allocation5 + $0x20] sm:$0xff]  }
 0x220   :  { %1514 = vxpose.xlu0.b32.end [2/2] (short) (narrow) %v1384_v50, 16  ;;  %v3348_v50 = vunpack.c.l.bf16 %v4422_v43 }
 0x224   :  { %1609 = vxpose.xlu0.b32.start [1/2] (short) (narrow) %v1394_v25, 16  ;;  %v3341_v25 = vunpack.c.h.bf16 %v4398_v16  ;;  %v3756_v16 = vunpack.i.h.bf16 %v4372_v15 }
 0x228   :  { %1610 = vxpose.xlu0.b32.end [2/2] (short) (narrow) %v1396_v40, 16 }
 0x22c   :  { %1641 = vxpose.xlu0.b32.start [1/2] (short) (narrow) %v1398_v54, 16 }
 0x230   :  { %1642 = vxpose.xlu0.b32.end [2/2] (short) (narrow) %v1400_v56, 16  ;;  %v3663_v56 = vpack.c.bf16 %v4264_v42, %v4345_v59 }
 0x23b   :  { %1481 = vxpose.xlu1.b32.start [1/2] (short) (narrow) %v1378_v21, 16 }
 0x23f   :  { %1482 = vxpose.xlu1.b32.end [2/2] (short) (narrow) %v1380_v38, 16 }
 0x243   :  { %1545 = vxpose.xlu1.b32.start [1/2] (short) (narrow) %v4368_v4, 16  ;;  %v433_v61 = vpop.trf.xlu0  ;;  %v3659_v4 = vpack.c.bf16 %v4313_v53, %v4299_v51 }
 0x244   :  { %v673_v62 = vmul.f32 %v3336_v60, %v433_v61 }
 0x246   :  { %3782 = vtanh.f32 %v673_v62 }
 0x247   :  { %1546 = vxpose.xlu1.b32.end [2/2] (short) (narrow) %v4366_v1, 16  ;;  %v434_v0 = vpop.trf.xlu0 }
 0x248   :  { %v674_v2 = vmul.f32 %v3337_v63, %v434_v0 }
 0x24a   :  { %3784 = vtanh.f32 %v674_v2  ;;  %v3349_v2 = vunpack.c.h.bf16 %v4422_v43 }
 0x24b   :  { %v4386_v3 = vpop.trf.xlu0 }
 0x24f   :  { %v4388_v5 = vpop.trf.xlu0 }
 0x250   :  { %v3783_v6 = vpop.eup %3782 }
 0x251   :  { %3507 = vmatprep.mubr.msk.f32.mxu1 %vm127_vm0, %v3783_v6  ;;  %v3356_v6 = vunpack.c.l.bf16 %v4430_v57 }
 0x253   :  { %v1433_v7 = vpop.trf.xlu0 }
 0x254   :  { %v3785_v8 = vpop.eup %3784  ;;  %v1673_v9 = vmul.f32 %v3336_v60, %v1433_v7  ;;  %v3352_v60 = vunpack.c.l.bf16 %v4424_v48 }
 0x255   :  { %3508 = vmatmul.mubr.msk.f32.vlgmr.msra.gmra.mrb[8].mxu1 %vm127_vm0, %v3785_v8  ;;  %v3667_v8 = vpack.c.bf16 %v4230_v23, %v4256_v37 }
 0x256   :  { %3786 = vtanh.f32 %v1673_v9  ;;  %3658 = vmatpush3.bf16.msra.mxu1 %v4253_v34  ;;  %v4404_v34 = vpack.c.bf16 %v3751_v13, %v3750_v14  ;;  %v4442_v9 = vld [vmem:[#allocation5 + $0x30] sm:$0xff]  }
 0x257   :  { %3660 = vmatprep.subr.bf16.mxu1 %v3659_v4  ;;  %v1434_v1 = vpop.trf.xlu0  ;;  %v3360_v14 = vunpack.c.l.bf16 %v4442_v9 }
 0x258   :  { %v1674_v11 = vmul.f32 %v3337_v63, %v1434_v1  ;;  %v3353_v63 = vunpack.c.h.bf16 %v4424_v48 }
 0x25a   :  { %3788 = vtanh.f32 %v1674_v11  ;;  %v682_v11 = vmul.f32 %v3353_v63, %v4388_v5 }
 0x260   :  { %v3787_v12 = vpop.eup %3786 }
 0x261   :  { %3563 = vmatprep.mubr.msk.f32.mxu0 %vm127_vm0, %v3787_v12  ;;  %v3357_v12 = vunpack.c.h.bf16 %v4430_v57 }
 0x264   :  { %v3789_v18 = vpop.eup %3788 }
 0x265   :  { %3564 = vmatmul.mubr.msk.f32.vlgmr.msra.gmra.mrb[8].mxu0 %vm127_vm0, %v3789_v18 }
 0x266   :  { %3694 = vmatpush3.bf16.msra.mxu0 %v4376_v32  ;;  %v3345_v32 = vunpack.c.h.bf16 %v4406_v20  ;;  %v3771_v20 = vunpack.i.h.bf16 %v4378_v36 }
 0x267   :  { %3700 = vmatprep.subr.bf16.mxu0 %v4404_v34 }
 0x268   :  { %v465_v10 = vpop.trf.xlu1 }
 0x269   :  { %v675_v21 = vmul.f32 %v3340_v19, %v465_v10 }
 0x26b   :  { %3790 = vtanh.f32 %v675_v21  ;;  %v3361_v21 = vunpack.c.h.bf16 %v4442_v9 }
 0x26c   :  { %v466_v28 = vpop.trf.xlu1  ;;  %v497_v29 = vpop.trf.xlu0 }
 0x26d   :  { %v676_v30 = vmul.f32 %v3341_v25, %v466_v28  ;;  %v677_v35 = vmul.f32 %v3344_v27, %v497_v29  ;;  %v4461_v29 = vld [vmem:[#allocation5 + $0x38] sm:$0xff]  }
 0x26f   :  { %3792 = vtanh.f32 %v676_v30 }
 0x270   :  { %3794 = vtanh.f32 %v677_v35  ;;  %v498_v38 = vpop.trf.xlu0  ;;  %v593_v7 = vpop.trf.xlu1 }
 0x271   :  { %v678_v39 = vmul.f32 %v3345_v32, %v498_v38  ;;  %v683_v18 = vmul.f32 %v3356_v6, %v593_v7 }
 0x273   :  { %3796 = vtanh.f32 %v678_v39  ;;  %v3364_v39 = vunpack.c.l.bf16 %v4461_v29 }
 0x274   :  { %v625_v40 = vpop.trf.xlu0  ;;  %v594_v10 = vpop.trf.xlu1 }
 0x275   :  { %v3791_v41 = vpop.eup %3790  ;;  %v684_v5 = vmul.f32 %v3357_v12, %v594_v10  ;;  %v685_v28 = vmul.f32 %v3360_v14, %v625_v40 }
 0x276   :  { %3514 = vmatprep.mubr.msk.f32.mxu1 %vm127_vm0, %v3791_v41 }
 0x278   :  { %v626_v44 = vpop.trf.xlu0 }
 0x279   :  { %v3793_v47 = vpop.eup %3792  ;;  %v686_v38 = vmul.f32 %v3361_v21, %v626_v44  ;;  %v3671_v44 = vpack.c.bf16 %v4287_v49, %v4274_v46 }
 0x27a   :  { %v3795_v54 = vpop.eup %3794  ;;  %3515 = vmatmul.mubr.msk.f32.vlgmr.msra.gmra.mrb[10].mxu1 %vm127_vm0, %v3793_v47 }
 0x27b   :  { %3662 = vmatpush3.bf16.msra.mxu1 %v3659_v4  ;;  %3521 = vmatprep.mubr.msk.f32.mxu1 %vm127_vm0, %v3795_v54  ;;  %v681_v4 = vmul.f32 %v3352_v60, %v4386_v3  ;;  %v3365_v54 = vunpack.c.h.bf16 %v4461_v29 }
 0x27c   :  { %3664 = vmatprep.subr.bf16.mxu1 %v3663_v56  ;;  %v529_v61 = vpop.trf.xlu0 }
 0x27d   :  { %v3797_v62 = vpop.eup %3796  ;;  %v679_v0 = vmul.f32 %v3348_v50, %v529_v61 }
 0x27e   :  { %3522 = vmatmul.mubr.msk.f32.vlgmr.msra.gmra.mrb[12].mxu1 %vm127_vm0, %v3797_v62 }
 0x27f   :  { %3798 = vtanh.f32 %v679_v0  ;;  %3666 = vmatpush3.bf16.msra.mxu1 %v3663_v56 }
 0x280   :  { %3668 = vmatprep.subr.bf16.mxu1 %v3667_v8  ;;  %v530_v1 = vpop.trf.xlu0 }
 0x281   :  { %v680_v13 = vmul.f32 %v3349_v2, %v530_v1 }
 0x283   :  { %3800 = vtanh.f32 %v680_v13 }
 0x284   :  { %3802 = vtanh.f32 %v681_v4  ;;  %v1465_v3 = vpop.trf.xlu0 }
 0x285   :  { %3804 = vtanh.f32 %v682_v11  ;;  %v1675_v61 = vmul.f32 %v3340_v19, %v1465_v3  ;;  %v3675_v19 = vpack.c.bf16 %v4322_v55, %v4306_v52 }
 0x286   :  { %3806 = vtanh.f32 %v683_v18  ;;  %v3679_v18 = vpack.c.bf16 %v4338_v58, %v4267_v45 }
 0x287   :  { %3808 = vtanh.f32 %v684_v5 }
 0x288   :  { %v1466_v30 = vpop.trf.xlu0  ;;  %3810 = vtanh.f32 %v685_v28  ;;  %v3776_v28 = vunpack.i.h.bf16 %v4400_v17 }
 0x289   :  { %v3799_v35 = vpop.eup %3798  ;;  %3812 = vtanh.f32 %v686_v38  ;;  %v1676_v4 = vmul.f32 %v3341_v25, %v1466_v30  ;;  %v3755_v25 = vunpack.i.l.bf16 %v4372_v15  ;;  %v3775_v30 = vunpack.i.l.bf16 %v4400_v17 }
 0x28a   :  { %3528 = vmatprep.mubr.msk.f32.mxu1 %vm127_vm0, %v3799_v35 }
 0x28b   :  { %v3687_v35 = vpack.c.bf16 %v3756_v16, %v3755_v25 }
 0x28c   :  { %v657_v41 = vpop.trf.xlu0 }
 0x28d   :  { %v3801_v47 = vpop.eup %3800  ;;  %v687_v40 = vmul.f32 %v3364_v39, %v657_v41 }
 0x28e   :  { %v3803_v56 = vpop.eup %3802  ;;  %3529 = vmatmul.mubr.msk.f32.vlgmr.msra.gmra.mrb[14].mxu1 %vm127_vm0, %v3801_v47 }
 0x28f   :  { %v3805_v62 = vpop.eup %3804  ;;  %3814 = vtanh.f32 %v687_v40  ;;  %3670 = vmatpush3.bf16.msra.mxu1 %v3667_v8  ;;  %3535 = vmatprep.mubr.msk.f32.mxu1 %vm127_vm0, %v3803_v56  ;;  %v3761_v40 = vunpack.i.h.bf16 %v4374_v24  ;;  %v3760_v56 = vunpack.i.l.bf16 %v4374_v24 }
 0x290   :  { %v3807_v0 = vpop.eup %3806  ;;  %3672 = vmatprep.subr.bf16.mxu1 %v3671_v44  ;;  %v658_v7 = vpop.trf.xlu0  ;;  %3816 = vtanh.f32 %v1675_v61  ;;  %v3695_v61 = vpack.c.bf16 %v3776_v28, %v3775_v30 }
 0x291   :  { %v688_v1 = vmul.f32 %v3365_v54, %v658_v7  ;;  %v3809_v11 = vpop.eup %3808  ;;  %v3703_v24 = vpack.c.bf16 %v3761_v40, %v3760_v56  ;;  %v3779_v7 = vpop.permute.xlu1 %3778  ;;  %v2499_v56 = vld [vmem:[#allocation10 + $0x10] sm:$0xff] }
 0x292   :  { %3536 = vmatmul.mubr.msk.f32.vlgmr.msra.gmra.mrb[16].mxu1 %vm127_vm0, %v3805_v62  ;;  %v3811_v8 = vpop.eup %3810 }
 0x293   :  { %3818 = vtanh.f32 %v688_v1  ;;  %3674 = vmatpush3.bf16.msra.mxu1 %v3671_v44  ;;  %3542 = vmatprep.mubr.msk.f32.mxu1 %vm127_vm0, %v3807_v0  ;;  %v3813_v10 = vpop.eup %3812 }
 0x294   :  { %3676 = vmatprep.subr.bf16.mxu1 %v3675_v19  ;;  %v1593_v13 = vpop.trf.xlu0  ;;  %3820 = vtanh.f32 %v1676_v4 }
 0x295   :  { %v1683_v17 = vmul.f32 %v3356_v6, %v1593_v13 }
 0x296   :  { %3543 = vmatmul.mubr.msk.f32.vlgmr.msra.gmra.mrb[18].mxu1 %vm127_vm0, %v3809_v11  ;;  %v3780_v11 = vunpack.i.l.bf16 %v3779_v7 }
 0x297   :  { %3678 = vmatpush3.bf16.msra.mxu1 %v3675_v19  ;;  %3549 = vmatprep.mubr.msk.f32.mxu1 %vm127_vm0, %v3811_v8  ;;  %v3781_v19 = vunpack.i.h.bf16 %v3779_v7 }
 0x298   :  { %3680 = vmatprep.subr.bf16.mxu1 %v3679_v18  ;;  %v1594_v3 = vpop.trf.xlu0 }
 0x299   :  { %v3815_v5 = vpop.eup %3814  ;;  %v3711_v8 = vpack.c.bf16 %v3781_v19, %v3780_v11 }
 0x29a   :  { %3550 = vmatmul.mubr.msk.f32.vlgmr.msra.gmra.mrb[20].mxu1 %vm127_vm0, %v3813_v10  ;;  %v3817_v15 = vpop.eup %3816 }
 0x29b   :  { %3682 = vmatpush3.bf16.msra.mxu1 %v3679_v18  ;;  %3556 = vmatprep.mubr.msk.f32.mxu1 %vm127_vm0, %v3815_v5 }
 0x29c   :  { %3688 = vmatprep.subr.bf16.mxu1 %v3687_v35  ;;  %v1529_v38 = vpop.trf.xlu0 }
 0x29d   :  { %v3819_v41 = vpop.eup %3818  ;;  %v1679_v47 = vmul.f32 %v3348_v50, %v1529_v38  ;;  %v1684_v50 = vmul.f32 %v3357_v12, %v1594_v3 }
 0x29e   :  { %3557 = vmatmul.mubr.msk.f32.vlgmr.msra.gmra.mrb[22].mxu1 %vm127_vm0, %v3819_v41  ;;  %v3821_v44 = vpop.eup %3820  ;;  %v2498_v41 = vld [vmem:[#allocation10 + $0x8] sm:$0xff] }
 0x29f   :  { %3822 = vtanh.f32 %v1679_v47  ;;  %3690 = vmatpush3.bf16.msra.mxu1 %v3687_v35  ;;  %3570 = vmatprep.mubr.msk.f32.mxu1 %vm127_vm0, %v3817_v15 }
 0x2a0   :  { %3696 = vmatprep.subr.bf16.mxu1 %v3695_v61  ;;  %v1530_v62 = vpop.trf.xlu0  ;;  %3824 = vtanh.f32 %v1683_v17  ;;  %v2500_v17 = vld [vmem:[#allocation10 + $0x18] sm:$0xff] }
 0x2a1   :  { %v1680_v0 = vmul.f32 %v3349_v2, %v1530_v62 }
 0x2a2   :  { %3571 = vmatmul.mubr.msk.f32.vlgmr.msra.gmra.mrb[24].mxu1 %vm127_vm0, %v3821_v44 }
 0x2a3   :  { %3826 = vtanh.f32 %v1680_v0  ;;  %3698 = vmatpush3.bf16.msra.mxu1 %v3695_v61  ;;  %v3719_v61 = vpack.c.bf16 %v2500_v17, %v2499_v56 }
 0x2a4   :  { %3704 = vmatprep.subr.bf16.mxu1 %v3703_v24  ;;  %v1625_v6 = vpop.trf.xlu0  ;;  %3828 = vtanh.f32 %v1684_v50 }
 0x2a5   :  { %v1685_v30 = vmul.f32 %v3360_v14, %v1625_v6 }
 0x2a8   :  { %v1626_v4 = vpop.trf.xlu0 }
 0x2a9   :  { %v3823_v1 = vpop.eup %3822  ;;  %v1686_v38 = vmul.f32 %v3361_v21, %v1626_v4  ;;  %v2497_v21 = vld [vmem:[#allocation10] sm:$0xff] }
 0x2aa   :  { %3584 = vmatprep.mubr.msk.f32.mxu1 %vm127_vm0, %v3823_v1  ;;  %v3825_v57 = vpop.eup %3824  ;;  %v3715_v40 = vpack.c.bf16 %v2498_v41, %v2497_v21 }
 0x2ac   :  { %v1657_v12 = vpop.trf.xlu0 }
 0x2ad   :  { %v3827_v43 = vpop.eup %3826  ;;  %v1687_v2 = vmul.f32 %v3364_v39, %v1657_v12 }
 0x2ae   :  { %3585 = vmatmul.mubr.msk.f32.vlgmr.msra.gmra.mrb[26].mxu1 %vm127_vm0, %v3827_v43  ;;  %v3829_v13 = vpop.eup %3828 }
 0x2af   :  { %3706 = vmatpush3.bf16.msra.mxu1 %v3703_v24  ;;  %3598 = vmatprep.mubr.msk.f32.mxu1 %vm127_vm0, %v3825_v57  ;;  %3830 = vtanh.f32 %v1687_v2 }
 0x2b0   :  { %3712 = vmatprep.subr.bf16.mxu1 %v3711_v8  ;;  %v1658_v16 = vpop.trf.xlu0 }
 0x2b1   :  { %v1688_v25 = vmul.f32 %v3365_v54, %v1658_v16 }
 0x2b2   :  { %3599 = vmatmul.mubr.msk.f32.vlgmr.msra.gmra.mrb[28].mxu1 %vm127_vm0, %v3829_v13 }
 0x2b3   :  { %3714 = vmatpush3.bf16.msra.mxu1 %v3711_v8  ;;  %3832 = vtanh.f32 %v1688_v25 }
 0x2b9   :  { %v3831_v18 = vpop.eup %3830 }
 0x2ba   :  { %3612 = vmatprep.mubr.msk.f32.mxu1 %vm127_vm0, %v3831_v18 }
 0x2bb   :  { %v1497_v39 = vpop.trf.xlu1 }
 0x2bc   :  { %v1677_v10 = vmul.f32 %v3344_v27, %v1497_v39 }
 0x2bd   :  { %v3833_v3 = vpop.eup %3832 }
 0x2be   :  { %3834 = vtanh.f32 %v1677_v10  ;;  %3613 = vmatmul.mubr.msk.f32.vlgmr.msra.gmra.mrb[30].mxu1 %vm127_vm0, %v3833_v3 }
 0x2bf   :  { %v1498_v5 = vpop.trf.xlu1 }
 0x2c0   :  { %v1678_v29 = vmul.f32 %v3345_v32, %v1498_v5  ;;  %v3770_v32 = vunpack.i.l.bf16 %v4378_v36 }
 0x2c2   :  { %3836 = vtanh.f32 %v1678_v29  ;;  %v3707_v14 = vpack.c.bf16 %v3771_v20, %v3770_v32 }
 0x2c3   :  { %v1561_v54 = vpop.trf.xlu1 }
 0x2c4   :  { %v1681_v28 = vmul.f32 %v3352_v60, %v1561_v54 }
 0x2c6   :  { %3838 = vtanh.f32 %v1681_v28 }
 0x2c7   :  { %v1562_v35 = vpop.trf.xlu1  ;;  %3840 = vtanh.f32 %v1685_v30 }
 0x2c8   :  { %v3835_v15 = vpop.eup %3834  ;;  %v1682_v27 = vmul.f32 %v3353_v63, %v1562_v35 }
 0x2c9   :  { %3577 = vmatprep.mubr.msk.f32.mxu0 %vm127_vm0, %v3835_v15 }
 0x2ca   :  { %3842 = vtanh.f32 %v1682_v27 }
 0x2cb   :  { %3844 = vtanh.f32 %v1686_v38 }
 0x2cc   :  { %v3837_v60 = vpop.eup %3836 }
 0x2cd   :  { %3578 = vmatmul.mubr.msk.f32.vlgmr.msra.gmra.mrb[10].mxu0 %vm127_vm0, %v3837_v60 }
 0x2ce   :  { %3702 = vmatpush3.bf16.msra.mxu0 %v4404_v34 }
 0x2cf   :  { %3708 = vmatprep.subr.bf16.mxu0 %v3707_v14 }
 0x2d0   :  { %v3839_v48 = vpop.eup %3838 }
 0x2d1   :  { %3591 = vmatprep.mubr.msk.f32.mxu0 %vm127_vm0, %v3839_v48  ;;  %v3841_v63 = vpop.eup %3840 }
 0x2d4   :  { %v3843_v9 = vpop.eup %3842 }
 0x2d5   :  { %3592 = vmatmul.mubr.msk.f32.vlgmr.msra.gmra.mrb[12].mxu0 %vm127_vm0, %v3843_v9  ;;  %v3845_v36 = vpop.eup %3844 }
 0x2d6   :  { %3710 = vmatpush3.bf16.msra.mxu0 %v3707_v14  ;;  %3605 = vmatprep.mubr.msk.f32.mxu0 %vm127_vm0, %v3841_v63 }
 0x2d7   :  { %3716 = vmatprep.subr.bf16.mxu0 %v3715_v40 }
 0x2d9   :  { %3606 = vmatmul.mubr.msk.f32.vlgmr.msra.gmra.mrb[14].mxu0 %vm127_vm0, %v3845_v36 }
 0x2da   :  { %3718 = vmatpush3.bf16.msra.mxu0 %v3715_v40 }
 0x2db   :  { %3720 = vmatprep.subr.bf16.mxu0 %v3719_v61 }
 0x2de   :  { %3722 = vmatpush3.bf16.msra.mxu0 %v3719_v61 }
 0x328   :  { %v4538_v47 = vpop.f32.mrb[8].mxu1 }
 0x329   :  { %v4540_v34 = vpop.f32.mrb[9].mxu1  ;;  %v1354_v17 = vmax.f32 %v4538_v47, 0.0 }
 0x32a   :  { %v1353_v41 = vmax.f32 %v4540_v34, 0.0 }
 0x338   :  { %v3565_v44 = vpop.f32.mrb[8].mxu0 }
 0x339   :  { %v2402_v62 = vmax.f32 %v3565_v44, 0.0  ;;  %v1783_v50 = vpop.f32.mrb[9].mxu0 }
 0x33a   :  { %v2401_v0 = vmax.f32 %v1783_v50, 0.0 }
 0x33b   :  { %2435 = vrot.lane.b32.xlu1 %v2402_v62, %s4087_s24 }
 0x33c   :  { %2433 = vrot.lane.b32.xlu0 %v2401_v0, %s4087_s24 }
 0x34d   :  { %v4544_v24 = vpop.f32.mrb[10].mxu1 }
 0x34e   :  { %v4546_v6 = vpop.f32.mrb[11].mxu1 }
 0x351   :  { %v4548_v7 = vpop.f32.mrb[12].mxu1 }
 0x352   :  { %v4550_v4 = vpop.f32.mrb[13].mxu1 }
 0x361   :  { %v4552_v1 = vpop.f32.mrb[14].mxu1 }
 0x362   :  { %v4554_v19 = vpop.f32.mrb[15].mxu1 }
 0x365   :  { %v4556_v11 = vpop.f32.mrb[16].mxu1 }
 0x366   :  { %v4558_v57 = vpop.f32.mrb[17].mxu1 }
 0x369   :  { %v4560_v12 = vpop.f32.mrb[18].mxu1 }
 0x36a   :  { %v4562_v43 = vpop.f32.mrb[19].mxu1 }
 0x36d   :  { %v4564_v2 = vpop.f32.mrb[20].mxu1 }
 0x36e   :  { %v4566_v8 = vpop.f32.mrb[21].mxu1 }
 0x371   :  { %v4568_v13 = vpop.f32.mrb[22].mxu1 }
 0x372   :  { %v4570_v16 = vpop.f32.mrb[23].mxu1 }
 0x375   :  { %v3572_v25 = vpop.f32.mrb[24].mxu1 }
 0x376   :  { %v1870_v18 = vpop.f32.mrb[25].mxu1  ;;  %v2404_v10 = vmax.f32 %v3572_v25, 0.0  ;;  %v1355_v25 = vmax.f32 %v4546_v6, 0.0 }
 0x377   :  { %v2403_v39 = vmax.f32 %v1870_v18, 0.0 }
 0x379   :  { %2437 = vrot.lane.b32.xlu0 %v2403_v39, %s4087_s24 }
 0x37d   :  { %2439 = vrot.lane.b32.xlu0 %v2404_v10, %s4087_s24  ;;  %v1356_v10 = vmax.f32 %v4544_v24, 0.0 }
 0x381   :  { %v3586_v3 = vpop.f32.mrb[26].mxu1 }
 0x382   :  { %v2044_v5 = vpop.f32.mrb[27].mxu1  ;;  %v2408_v20 = vmax.f32 %v3586_v3, 0.0 }
 0x383   :  { %v2407_v32 = vmax.f32 %v2044_v5, 0.0 }
 0x385   :  { %v3600_v29 = vpop.f32.mrb[28].mxu1 }
 0x386   :  { %v2218_v54 = vpop.f32.mrb[29].mxu1  ;;  %v2412_v36 = vmax.f32 %v3600_v29, 0.0  ;;  %v1357_v29 = vmax.f32 %v4550_v4, 0.0 }
 0x387   :  { %v2411_v40 = vmax.f32 %v2218_v54, 0.0 }
 0x391   :  { %v3614_v28 = vpop.f32.mrb[30].mxu1 }
 0x392   :  { %v2392_v30 = vpop.f32.mrb[31].mxu1  ;;  %v2416_v34 = vmax.f32 %v3614_v28, 0.0  ;;  %v1358_v28 = vmax.f32 %v4548_v7, 0.0  ;;  %v1361_v7 = vmax.f32 %v4558_v57, 0.0 }
 0x393   :  { %v2415_v47 = vmax.f32 %v2392_v30, 0.0 }
 0x3a0   :  { %v3579_v35 = vpop.f32.mrb[10].mxu0 }
 0x3a1   :  { %v2406_v15 = vmax.f32 %v3579_v35, 0.0  ;;  %v1957_v27 = vpop.f32.mrb[11].mxu0 }
 0x3a2   :  { %v2405_v38 = vmax.f32 %v1957_v27, 0.0  ;;  %v1360_v27 = vmax.f32 %v4552_v1, 0.0  ;;  %v1363_v1 = vmax.f32 %v4562_v43, 0.0 }
 0x3a3   :  { %2443 = vrot.lane.b32.xlu0 %v2406_v15, %s4087_s24  ;;  %v1359_v15 = vmax.f32 %v4554_v19, 0.0 }
 0x3a4   :  { %2441 = vrot.lane.b32.xlu1 %v2405_v38, %s4087_s24 }
 0x3a7   :  { %2447 = vrot.lane.b32.xlu0 %v2408_v20, %s4087_s24 }
 0x3a8   :  { %v3593_v60 = vpop.f32.mrb[12].mxu0  ;;  %2445 = vrot.lane.b32.xlu1 %v2407_v32, %s4087_s24 }
 0x3a9   :  { %v2410_v14 = vmax.f32 %v3593_v60, 0.0  ;;  %v2131_v48 = vpop.f32.mrb[13].mxu0  ;;  %v1362_v60 = vmax.f32 %v4556_v11, 0.0  ;;  %v1365_v11 = vmax.f32 %v4566_v8, 0.0 }
 0x3aa   :  { %v2409_v63 = vmax.f32 %v2131_v48, 0.0 }
 0x3ab   :  { %2451 = vrot.lane.b32.xlu0 %v2410_v14, %s4087_s24 }
 0x3ac   :  { %v3607_v9 = vpop.f32.mrb[14].mxu0  ;;  %2449 = vrot.lane.b32.xlu1 %v2409_v63, %s4087_s24 }
 0x3ad   :  { %v2305_v21 = vpop.f32.mrb[15].mxu0  ;;  %v2436_v56 = vpop.permute.xlu1 %2435  ;;  %v2414_v62 = vmax.f32 %v3607_v9, 0.0  ;;  %v1364_v9 = vmax.f32 %v4560_v12, 0.0  ;;  %v1367_v12 = vmax.f32 %v4570_v16, 0.0 }
 0x3ae   :  { %v2434_v61 = vpop.permute.xlu0 %2433  ;;  %v2482_v50 = vsel %vm127_vm0, %v1354_v17, %v2436_v56  ;;  %v2413_v0 = vmax.f32 %v2305_v21, 0.0 }
 0x3af   :  { %2455 = vrot.lane.b32.xlu0 %v2412_v36, %s4087_s24  ;;  %v2481_v44 = vsel %vm127_vm0, %v1353_v41, %v2434_v61 }
 0x3b0   :  { %2453 = vrot.lane.b32.xlu1 %v2411_v40, %s4087_s24  ;;  %3623 = vmatprep.mubr.msk.f32.mxu0 %vm2501_vm1, %v2481_v44  ;;  %v1366_v40 = vmax.f32 %v4564_v2, 0.0  ;;  %v1368_v44 = vmax.f32 %v4568_v13, 0.0 }
 0x3b1   :  { %3624 = vmatmul.mubr.msk.f32.vlgmr.msra.gmra.mrb[16].mxu0 %vm2501_vm1, %v2482_v50 }
 0x3b3   :  { %2459 = vrot.lane.b32.xlu0 %v2414_v62, %s4087_s24 }
 0x3b4   :  { %2457 = vrot.lane.b32.xlu1 %v2413_v0, %s4087_s24 }
 0x3b7   :  { %2463 = vrot.lane.b32.xlu0 %v2416_v34, %s4087_s24 }
 0x3b8   :  { %2461 = vrot.lane.b32.xlu1 %v2415_v47, %s4087_s24 }
 0x3eb   :  { %v2438_v18 = vpop.permute.xlu0 %2437 }
 0x3ec   :  { %v2483_v39 = vsel %vm127_vm0, %v1355_v25, %v2438_v18 }
 0x3ed   :  { %3626 = vmatprep.mubr.msk.f32.mxu0 %vm2501_vm1, %v2483_v39 }
 0x3ef   :  { %v2440_v3 = vpop.permute.xlu0 %2439 }
 0x3f0   :  { %v2484_v5 = vsel %vm127_vm0, %v1356_v10, %v2440_v3 }
 0x3f1   :  { %3627 = vmatmul.mubr.msk.f32.gmra.mrb[18].mxu0 %vm2501_vm1, %v2484_v5 }
 0x415   :  { %v2444_v54 = vpop.permute.xlu0 %2443 }
 0x416   :  { %v2442_v30 = vpop.permute.xlu1 %2441  ;;  %v2486_v35 = vsel %vm127_vm0, %v1358_v28, %v2444_v54 }
 0x417   :  { %v2485_v6 = vsel %vm127_vm0, %v1357_v29, %v2442_v30 }
 0x418   :  { %3629 = vmatprep.mubr.msk.f32.mxu0 %vm2501_vm1, %v2485_v6  ;;  %v3333_v6 = vld [vmem:[#allocation11] ss:$0 sm:$0xff] }
 0x419   :  { %3630 = vmatmul.mubr.msk.f32.gmra.mrb[20].mxu0 %vm2501_vm1, %v2486_v35  ;;  %v2448_v24 = vpop.permute.xlu0 %2447 }
 0x41a   :  { %v2446_v38 = vpop.permute.xlu1 %2445  ;;  %v2488_v20 = vsel %vm127_vm0, %v1360_v27, %v2448_v24 }
 0x41b   :  { %v2487_v4 = vsel %vm127_vm0, %v1359_v15, %v2446_v38 }
 0x41c   :  { %3632 = vmatprep.mubr.msk.f32.mxu0 %vm2501_vm1, %v2487_v4 }
 0x41d   :  { %v2452_v32 = vpop.permute.xlu0 %2451  ;;  %3633 = vmatmul.mubr.msk.f32.gmra.mrb[22].mxu0 %vm2501_vm1, %v2488_v20 }
 0x41e   :  { %v2450_v19 = vpop.permute.xlu1 %2449  ;;  %v2490_v48 = vsel %vm127_vm0, %v1362_v60, %v2452_v32 }
 0x41f   :  { %v2489_v14 = vsel %vm127_vm0, %v1361_v7, %v2450_v19 }
 0x420   :  { %3635 = vmatprep.mubr.msk.f32.mxu0 %vm2501_vm1, %v2489_v14 }
 0x421   :  { %3636 = vmatmul.mubr.msk.f32.gmra.mrb[24].mxu0 %vm2501_vm1, %v2490_v48  ;;  %v2456_v63 = vpop.permute.xlu0 %2455 }
 0x422   :  { %v2454_v57 = vpop.permute.xlu1 %2453  ;;  %v2492_v21 = vsel %vm127_vm0, %v1364_v9, %v2456_v63 }
 0x423   :  { %v2491_v36 = vsel %vm127_vm0, %v1363_v1, %v2454_v57 }
 0x424   :  { %3638 = vmatprep.mubr.msk.f32.mxu0 %vm2501_vm1, %v2491_v36 }
 0x425   :  { %v2460_v41 = vpop.permute.xlu0 %2459  ;;  %3639 = vmatmul.mubr.msk.f32.gmra.mrb[26].mxu0 %vm2501_vm1, %v2492_v21 }
 0x426   :  { %v2458_v43 = vpop.permute.xlu1 %2457  ;;  %v2494_v17 = vsel %vm127_vm0, %v1366_v40, %v2460_v41 }
 0x427   :  { %v2493_v56 = vsel %vm127_vm0, %v1365_v11, %v2458_v43 }
 0x428   :  { %3641 = vmatprep.mubr.msk.f32.mxu0 %vm2501_vm1, %v2493_v56 }
 0x429   :  { %3642 = vmatmul.mubr.msk.f32.gmra.mrb[28].mxu0 %vm2501_vm1, %v2494_v17  ;;  %v2464_v61 = vpop.permute.xlu0 %2463 }
 0x42a   :  { %v2462_v8 = vpop.permute.xlu1 %2461  ;;  %v2496_v50 = vsel %vm127_vm0, %v1368_v44, %v2464_v61 }
 0x42b   :  { %v2495_v62 = vsel %vm127_vm0, %v1367_v12, %v2462_v8 }
 0x42c   :  { %3644 = vmatprep.mubr.msk.f32.mxu0 %vm2501_vm1, %v2495_v62 }
 0x42d   :  { %3645 = vmatmul.mubr.msk.f32.gmra.mrb[30].mxu0 %vm2501_vm1, %v2496_v50 }
 0x484   :  { %v4634_v2 = vpop.f32.mrb[16].mxu0 }
 0x485   :  { %v4636_v0 = vpop.f32.mrb[17].mxu0  ;;  %2713 = vrot.lane.b32.xlu0 %v4634_v2, %s4075_s7 }
 0x486   :  { %2711 = vrot.lane.b32.xlu1 %v4636_v0, %s4075_s7 }
 0x4c4   :  { %v4642_v13 = vpop.f32.mrb[18].mxu0 }
 0x4c5   :  { %v4644_v16 = vpop.f32.mrb[19].mxu0  ;;  %2717 = vrot.lane.b32.xlu0 %v4642_v13, %s4075_s7 }
 0x4c6   :  { %2715 = vrot.lane.b32.xlu1 %v4644_v16, %s4075_s7 }
 0x4ec   :  { %v4650_v34 = vpop.f32.mrb[20].mxu0 }
 0x4ed   :  { %v4652_v47 = vpop.f32.mrb[21].mxu0  ;;  %2721 = vrot.lane.b32.xlu0 %v4650_v34, %s4075_s7 }
 0x4ee   :  { %2719 = vrot.lane.b32.xlu1 %v4652_v47, %s4075_s7 }
 0x4f0   :  { %v4658_v25 = vpop.f32.mrb[22].mxu0 }
 0x4f1   :  { %v4660_v18 = vpop.f32.mrb[23].mxu0  ;;  %2725 = vrot.lane.b32.xlu0 %v4658_v25, %s4075_s7 }
 0x4f2   :  { %2723 = vrot.lane.b32.xlu1 %v4660_v18, %s4075_s7 }
 0x4f4   :  { %v4666_v39 = vpop.f32.mrb[24].mxu0 }
 0x4f5   :  { %v4668_v10 = vpop.f32.mrb[25].mxu0  ;;  %2729 = vrot.lane.b32.xlu0 %v4666_v39, %s4075_s7 }
 0x4f6   :  { %2727 = vrot.lane.b32.xlu1 %v4668_v10, %s4075_s7 }
 0x4f7   :  { %v2714_v35 = vpop.permute.xlu0 %2713 }
 0x4f8   :  { %v4674_v3 = vpop.f32.mrb[26].mxu0  ;;  %v2712_v15 = vpop.permute.xlu1 %2711  ;;  %v2760_v24 = vadd.f32 %v2714_v35, %v4227_v22 }
 0x4f9   :  { %v4676_v5 = vpop.f32.mrb[27].mxu0  ;;  %2733 = vrot.lane.b32.xlu0 %v4674_v3, %s4075_s7  ;;  %v2759_v27 = vadd.f32 %v2712_v15, %v4233_v26 }
 0x4fa   :  { %2731 = vrot.lane.b32.xlu1 %v4676_v5, %s4075_s7  ;;  %v3318_v20 = vmul.f32 -1.442695, %v2760_v24 }
 0x4fb   :  { %v3317_v32 = vmul.f32 -1.442695, %v2759_v27 }
 0x4fc   :  { %v4682_v29 = vpop.f32.mrb[28].mxu0  ;;  %3846 = vpow2.f32 %v3318_v20 }
 0x4fd   :  { %v4684_v54 = vpop.f32.mrb[29].mxu0  ;;  %2737 = vrot.lane.b32.xlu0 %v4682_v29, %s4075_s7  ;;  %3848 = vpow2.f32 %v3317_v32 }
 0x4fe   :  { %2735 = vrot.lane.b32.xlu1 %v4684_v54, %s4075_s7 }
 0x500   :  { %v4690_v28 = vpop.f32.mrb[30].mxu0 }
 0x501   :  { %2741 = vrot.lane.b32.xlu0 %v4690_v28, %s4075_s7  ;;  %v4694_v30 = vpop.f32.mrb[31].mxu0 }
 0x502   :  { %2739 = vrot.lane.b32.xlu1 %v4694_v30, %s4075_s7 }
 0x506   :  { %2877 = vrot.lane.b32.xlu1 %v3333_v6, %s4085_s0  ;;  %v3847_v36 = vpop.eup %3846 }
 0x507   :  { %v3849_v41 = vpop.eup %3848  ;;  %v2824_v17 = vadd.f32 1.0, %v3847_v36 }
 0x508   :  { %v2823_v44 = vadd.f32 1.0, %v3849_v41 }
 0x537   :  { %v2718_v38 = vpop.permute.xlu0 %2717 }
 0x538   :  { %v2716_v4 = vpop.permute.xlu1 %2715  ;;  %v2762_v7 = vadd.f32 %v2718_v38, %v4242_v31 }
 0x539   :  { %v2761_v60 = vadd.f32 %v2716_v4, %v4245_v33 }
 0x53a   :  { %v3320_v19 = vmul.f32 -1.442695, %v2762_v7 }
 0x53b   :  { %v3319_v14 = vmul.f32 -1.442695, %v2761_v60 }
 0x53c   :  { %3850 = vpow2.f32 %v3320_v19 }
 0x53d   :  { %3852 = vpow2.f32 %v3319_v14 }
 0x546   :  { %v3851_v61 = vpop.eup %3850 }
 0x547   :  { %v3853_v50 = vpop.eup %3852  ;;  %v2826_v24 = vadd.f32 1.0, %v3851_v61 }
 0x548   :  { %v2825_v38 = vadd.f32 1.0, %v3853_v50 }
 0x55f   :  { %v2722_v48 = vpop.permute.xlu0 %2721 }
 0x560   :  { %v2764_v1 = vadd.f32 %v2722_v48, %v4313_v53  ;;  %v2720_v63 = vpop.permute.xlu1 %2719 }
 0x561   :  { %v2763_v9 = vadd.f32 %v2720_v63, %v4299_v51 }
 0x562   :  { %v3322_v57 = vmul.f32 -1.442695, %v2764_v1 }
 0x563   :  { %v3321_v21 = vmul.f32 -1.442695, %v2763_v9  ;;  %v2726_v11 = vpop.permute.xlu0 %2725 }
 0x564   :  { %3854 = vpow2.f32 %v3322_v57  ;;  %v2766_v40 = vadd.f32 %v2726_v11, %v4264_v42  ;;  %v2724_v43 = vpop.permute.xlu1 %2723 }
 0x565   :  { %3856 = vpow2.f32 %v3321_v21  ;;  %v2765_v56 = vadd.f32 %v2724_v43, %v4345_v59 }
 0x566   :  { %v3324_v12 = vmul.f32 -1.442695, %v2766_v40 }
 0x567   :  { %v3323_v8 = vmul.f32 -1.442695, %v2765_v56  ;;  %v2730_v62 = vpop.permute.xlu0 %2729 }
 0x568   :  { %3858 = vpow2.f32 %v3324_v12  ;;  %v2768_v6 = vadd.f32 %v2730_v62, %v4230_v23  ;;  %v2728_v35 = vpop.permute.xlu1 %2727 }
 0x569   :  { %3860 = vpow2.f32 %v3323_v8  ;;  %v2767_v15 = vadd.f32 %v2728_v35, %v4256_v37 }
 0x56a   :  { %3862 = vrcp.f32 %v2824_v17  ;;  %v3326_v27 = vmul.f32 -1.442695, %v2768_v6 }
 0x56b   :  { %3864 = vrcp.f32 %v2823_v44  ;;  %v3325_v4 = vmul.f32 -1.442695, %v2767_v15  ;;  %v2734_v20 = vpop.permute.xlu0 %2733 }
 0x56c   :  { %3866 = vpow2.f32 %v3326_v27  ;;  %v2770_v7 = vadd.f32 %v2734_v20, %v4287_v49  ;;  %v2732_v32 = vpop.permute.xlu1 %2731 }
 0x56d   :  { %3868 = vpow2.f32 %v3325_v4  ;;  %v2769_v60 = vadd.f32 %v2732_v32, %v4274_v46 }
 0x56e   :  { %v3855_v19 = vpop.eup %3854  ;;  %3870 = vrcp.f32 %v2826_v24  ;;  %v3328_v14 = vmul.f32 -1.442695, %v2770_v7 }
 0x56f   :  { %v3857_v48 = vpop.eup %3856  ;;  %3872 = vrcp.f32 %v2825_v38  ;;  %v2828_v1 = vadd.f32 1.0, %v3855_v19  ;;  %v3327_v63 = vmul.f32 -1.442695, %v2769_v60  ;;  %v2738_v9 = vpop.permute.xlu0 %2737 }
 0x570   :  { %v2827_v57 = vadd.f32 1.0, %v3857_v48  ;;  %3874 = vpow2.f32 %v3328_v14  ;;  %v2772_v36 = vadd.f32 %v2738_v9, %v4322_v55  ;;  %v2736_v21 = vpop.permute.xlu1 %2735 }
 0x571   :  { %3876 = vrcp.f32 %v2828_v1  ;;  %v2771_v11 = vadd.f32 %v2736_v21, %v4306_v52 }
 0x572   :  { %v3859_v41 = vpop.eup %3858  ;;  %3878 = vrcp.f32 %v2827_v57  ;;  %v3330_v40 = vmul.f32 -1.442695, %v2772_v36 }
 0x573   :  { %v3861_v43 = vpop.eup %3860  ;;  %v2830_v56 = vadd.f32 1.0, %v3859_v41  ;;  %3880 = vpow2.f32 %v3327_v63  ;;  %v3329_v17 = vmul.f32 -1.442695, %v2771_v11  ;;  %v2742_v12 = vpop.permute.xlu0 %2741 }
 0x574   :  { %v3863_v61 = vpop.eup %3862  ;;  %v2829_v44 = vadd.f32 1.0, %v3861_v43  ;;  %3882 = vpow2.f32 %v3330_v40  ;;  %v2774_v8 = vadd.f32 %v2742_v12, %v4338_v58  ;;  %v2740_v62 = vpop.permute.xlu1 %2739 }
 0x575   :  { %v3865_v50 = vpop.eup %3864  ;;  %3884 = vrcp.f32 %v2830_v56  ;;  %v2773_v6 = vadd.f32 %v2740_v62, %v4267_v45 }
 0x576   :  { %v3867_v35 = vpop.eup %3866  ;;  %3886 = vrcp.f32 %v2829_v44  ;;  %v3332_v15 = vmul.f32 -1.442695, %v2774_v8 }
 0x577   :  { %v3869_v24 = vpop.eup %3868  ;;  %v2832_v27 = vadd.f32 1.0, %v3867_v35  ;;  %3888 = vpow2.f32 %v3329_v17  ;;  %v3331_v38 = vmul.f32 -1.442695, %v2773_v6 }
 0x578   :  { %v3871_v4 = vpop.eup %3870  ;;  %v2831_v20 = vadd.f32 1.0, %v3869_v24  ;;  %3890 = vpow2.f32 %v3332_v15  ;;  %v4715_v7 = vpop.permute.xlu1 %2877 }
 0x579   :  { %v3873_v32 = vpop.eup %3872  ;;  %v2881_v60 = vadd.f32 %v3863_v61, %v4715_v7  ;;  %v2880_v19 = vadd.f32 %v3865_v50, %v4715_v7  ;;  %3892 = vrcp.f32 %v2832_v27  ;;  %v4722_v21 = vadd.f32 %v3871_v4, %v4715_v7 }
 0x57a   :  { %v3875_v14 = vpop.eup %3874  ;;  %3894 = vpow2.f32 %v3331_v38  ;;  %v4725_v11 = vadd.f32 %v3873_v32, %v4715_v7 }
 0x57b   :  { %v3877_v48 = vpop.eup %3876  ;;  %v2834_v1 = vadd.f32 1.0, %v3875_v14  ;;  %2914 = vrot.lane.b32.xlu1 %v2881_v60, %s4086_s14  ;;  %2912 = vrot.lane.b32.xlu0 %v2880_v19, %s4086_s14  ;;  %3896 = vrcp.f32 %v2831_v20  ;;  %v2977_v57 = vsub.f32 1.0, %v2881_v60  ;;  %v2976_v36 = vsub.f32 1.0, %v2880_v19 }
 0x57c   :  { %v3879_v63 = vpop.eup %3878  ;;  %v2979_v61 = vsub.f32 1.0, %v4722_v21  ;;  %v2978_v44 = vsub.f32 1.0, %v4725_v11  ;;  %v2885_v8 = vadd.f32 %v3877_v48, %v4715_v7 }
 0x57d   :  { %v3881_v9 = vpop.eup %3880  ;;  %3898 = vrcp.f32 %v2834_v1  ;;  %v2884_v62 = vadd.f32 %v3879_v63, %v4715_v7 }
 0x57e   :  { %v3883_v41 = vpop.eup %3882  ;;  %v2833_v40 = vadd.f32 1.0, %v3881_v9  ;;  %v2981_v27 = vsub.f32 1.0, %v2885_v8 }
 0x57f   :  { %v3885_v43 = vpop.eup %3884  ;;  %v2836_v56 = vadd.f32 1.0, %v3883_v41  ;;  %3010 = vrot.lane.b32.xlu1 %v2977_v57, %s4088_s25  ;;  %3008 = vrot.lane.b32.xlu0 %v2976_v36, %s4088_s25  ;;  %v2980_v38 = vsub.f32 1.0, %v2884_v62 }
 0x580   :  { %v3887_v17 = vpop.eup %3886  ;;  %3900 = vrcp.f32 %v2833_v40  ;;  %v2887_v4 = vadd.f32 %v3885_v43, %v4715_v7 }
 0x581   :  { %v3889_v12 = vpop.eup %3888  ;;  %3902 = vrcp.f32 %v2836_v56  ;;  %v2886_v20 = vadd.f32 %v3887_v17, %v4715_v7 }
 0x582   :  { %v3891_v50 = vpop.eup %3890  ;;  %v2835_v6 = vadd.f32 1.0, %v3889_v12  ;;  %v2983_v14 = vsub.f32 1.0, %v2887_v4 }
 0x583   :  { %v2838_v35 = vadd.f32 1.0, %v3891_v50  ;;  %3014 = vrot.lane.b32.xlu1 %v2979_v61, %s4088_s25  ;;  %3012 = vrot.lane.b32.xlu0 %v2978_v44, %s4088_s25  ;;  %v3893_v15 = vpop.eup %3892  ;;  %v2982_v48 = vsub.f32 1.0, %v2886_v20 }
 0x584   :  { %3904 = vrcp.f32 %v2835_v6  ;;  %v3895_v24 = vpop.eup %3894  ;;  %v2889_v1 = vadd.f32 %v3893_v15, %v4715_v7 }
 0x585   :  { %v3897_v32 = vpop.eup %3896  ;;  %v2837_v60 = vadd.f32 1.0, %v3895_v24  ;;  %3906 = vrcp.f32 %v2838_v35 }
 0x586   :  { %v2888_v63 = vadd.f32 %v3897_v32, %v4715_v7  ;;  %v2985_v36 = vsub.f32 1.0, %v2889_v1 }
 0x587   :  { %3018 = vrot.lane.b32.xlu1 %v2981_v27, %s4088_s25  ;;  %3016 = vrot.lane.b32.xlu0 %v2980_v38, %s4088_s25  ;;  %3908 = vrcp.f32 %v2837_v60  ;;  %v3899_v19 = vpop.eup %3898 }
 0x588   :  { %v2984_v41 = vsub.f32 1.0, %v2888_v63  ;;  %v2891_v40 = vadd.f32 %v3899_v19, %v4715_v7 }
 0x58a   :  { %v3901_v9 = vpop.eup %3900  ;;  %v2987_v12 = vsub.f32 1.0, %v2891_v40 }
 0x58b   :  { %3022 = vrot.lane.b32.xlu1 %v2983_v14, %s4088_s25  ;;  %3020 = vrot.lane.b32.xlu0 %v2982_v48, %s4088_s25  ;;  %v3903_v57 = vpop.eup %3902  ;;  %v2890_v43 = vadd.f32 %v3901_v9, %v4715_v7 }
 0x58c   :  { %v2893_v44 = vadd.f32 %v3903_v57, %v4715_v7 }
 0x58d   :  { %v2986_v61 = vsub.f32 1.0, %v2890_v43 }
 0x58e   :  { %v3905_v56 = vpop.eup %3904  ;;  %v2989_v35 = vsub.f32 1.0, %v2893_v44 }
 0x58f   :  { %3026 = vrot.lane.b32.xlu1 %v2985_v36, %s4088_s25  ;;  %3024 = vrot.lane.b32.xlu0 %v2984_v41, %s4088_s25  ;;  %v3907_v17 = vpop.eup %3906  ;;  %v2892_v50 = vadd.f32 %v3905_v56, %v4715_v7 }
 0x590   :  { %v2895_v24 = vadd.f32 %v3907_v17, %v4715_v7 }
 0x591   :  { %v3909_v6 = vpop.eup %3908  ;;  %v2988_v15 = vsub.f32 1.0, %v2892_v50 }
 0x592   :  { %v2894_v27 = vadd.f32 %v3909_v6, %v4715_v7  ;;  %v2991_v38 = vsub.f32 1.0, %v2895_v24 }
 0x593   :  { %3030 = vrot.lane.b32.xlu1 %v2987_v12, %s4088_s25  ;;  %3028 = vrot.lane.b32.xlu0 %v2986_v61, %s4088_s25 }
 0x594   :  { %v2990_v32 = vsub.f32 1.0, %v2894_v27 }
 0x597   :  { %3034 = vrot.lane.b32.xlu1 %v2989_v35, %s4088_s25  ;;  %3032 = vrot.lane.b32.xlu0 %v2988_v15, %s4088_s25 }
 0x59b   :  { %3038 = vrot.lane.b32.xlu1 %v2991_v38, %s4088_s25  ;;  %3036 = vrot.lane.b32.xlu0 %v2990_v32, %s4088_s25 }
 0x59f   :  { %2918 = vrot.lane.b32.xlu1 %v4722_v21, %s4086_s14  ;;  %2916 = vrot.lane.b32.xlu0 %v4725_v11, %s4086_s14 }
 0x5a3   :  { %2922 = vrot.lane.b32.xlu1 %v2885_v8, %s4086_s14  ;;  %2920 = vrot.lane.b32.xlu0 %v2884_v62, %s4086_s14 }
 0x5a7   :  { %2926 = vrot.lane.b32.xlu1 %v2887_v4, %s4086_s14  ;;  %2924 = vrot.lane.b32.xlu0 %v2886_v20, %s4086_s14 }
 0x5ab   :  { %2930 = vrot.lane.b32.xlu1 %v2889_v1, %s4086_s14  ;;  %2928 = vrot.lane.b32.xlu0 %v2888_v63, %s4086_s14 }
 0x5af   :  { %2934 = vrot.lane.b32.xlu1 %v2891_v40, %s4086_s14  ;;  %2932 = vrot.lane.b32.xlu0 %v2890_v43, %s4086_s14 }
 0x5b3   :  { %2938 = vrot.lane.b32.xlu1 %v2893_v44, %s4086_s14  ;;  %2936 = vrot.lane.b32.xlu0 %v2892_v50, %s4086_s14 }
 0x5b7   :  { %2942 = vrot.lane.b32.xlu1 %v2895_v24, %s4086_s14  ;;  %2940 = vrot.lane.b32.xlu0 %v2894_v27, %s4086_s14 }
 0x5ed   :  { %v4773_v7 = vpop.permute.xlu1 %2914  ;;  %v4775_v21 = vpop.permute.xlu0 %2912 }
 0x5f1   :  { %v3011_v11 = vpop.permute.xlu1 %3010  ;;  %v3009_v8 = vpop.permute.xlu0 %3008 }
 0x5f2   :  { %v3057_v62 = vmul.f32 %v4634_v2, %v3011_v11  ;;  %v3056_v4 = vmul.f32 %v3009_v8, %v4636_v0  ;;  %v2960_v8 = vmul.f32 %v4775_v21, %v4233_v26 }
 0x5f4   :  { %3090 = vrot.lane.b32.xlu1 %v3057_v62, %s4075_s7  ;;  %3088 = vrot.lane.b32.xlu0 %v3056_v4, %s4075_s7 }
 0x5f5   :  { %v3015_v20 = vpop.permute.xlu1 %3014  ;;  %v3013_v60 = vpop.permute.xlu0 %3012 }
 0x5f6   :  { %v3059_v19 = vmul.f32 %v4642_v13, %v3015_v20  ;;  %v3058_v14 = vmul.f32 %v3013_v60, %v4644_v16 }
 0x5f8   :  { %3094 = vrot.lane.b32.xlu1 %v3059_v19, %s4075_s7  ;;  %3092 = vrot.lane.b32.xlu0 %v3058_v14, %s4075_s7 }
 0x5f9   :  { %v3019_v48 = vpop.permute.xlu1 %3018  ;;  %v3017_v1 = vpop.permute.xlu0 %3016 }
 0x5fa   :  { %v3061_v2 = vmul.f32 %v4650_v34, %v3019_v48  ;;  %v3060_v0 = vmul.f32 %v3017_v1, %v4652_v47 }
 0x5fc   :  { %3098 = vrot.lane.b32.xlu1 %v3061_v2, %s4075_s7  ;;  %3096 = vrot.lane.b32.xlu0 %v3060_v0, %s4075_s7 }
 0x5fd   :  { %v3023_v63 = vpop.permute.xlu1 %3022  ;;  %v3021_v9 = vpop.permute.xlu0 %3020 }
 0x5fe   :  { %v3063_v13 = vmul.f32 %v4658_v25, %v3023_v63  ;;  %v3062_v16 = vmul.f32 %v3021_v9, %v4660_v18 }
 0x600   :  { %3102 = vrot.lane.b32.xlu1 %v3063_v13, %s4075_s7  ;;  %3100 = vrot.lane.b32.xlu0 %v3062_v16, %s4075_s7 }
 0x601   :  { %v3027_v57 = vpop.permute.xlu1 %3026  ;;  %v3025_v36 = vpop.permute.xlu0 %3024 }
 0x602   :  { %v3065_v34 = vmul.f32 %v4666_v39, %v3027_v57  ;;  %v3064_v47 = vmul.f32 %v3025_v36, %v4668_v10 }
 0x604   :  { %3106 = vrot.lane.b32.xlu1 %v3065_v34, %s4075_s7  ;;  %3104 = vrot.lane.b32.xlu0 %v3064_v47, %s4075_s7 }
 0x605   :  { %v3031_v41 = vpop.permute.xlu1 %3030  ;;  %v3029_v40 = vpop.permute.xlu0 %3028 }
 0x606   :  { %v3067_v25 = vmul.f32 %v4674_v3, %v3031_v41  ;;  %v3066_v18 = vmul.f32 %v3029_v40, %v4676_v5 }
 0x608   :  { %3110 = vrot.lane.b32.xlu1 %v3067_v25, %s4075_s7  ;;  %3108 = vrot.lane.b32.xlu0 %v3066_v18, %s4075_s7 }
 0x609   :  { %v3035_v43 = vpop.permute.xlu1 %3034  ;;  %v3033_v56 = vpop.permute.xlu0 %3032 }
 0x60a   :  { %v3069_v39 = vmul.f32 %v4682_v29, %v3035_v43  ;;  %v3068_v10 = vmul.f32 %v3033_v56, %v4684_v54 }
 0x60c   :  { %3114 = vrot.lane.b32.xlu1 %v3069_v39, %s4075_s7  ;;  %3112 = vrot.lane.b32.xlu0 %v3068_v10, %s4075_s7 }
 0x60d   :  { %v3039_v17 = vpop.permute.xlu1 %3038  ;;  %v3037_v12 = vpop.permute.xlu0 %3036 }
 0x60e   :  { %v3071_v3 = vmul.f32 %v4690_v28, %v3039_v17  ;;  %v3070_v5 = vmul.f32 %v3037_v12, %v4694_v30  ;;  %v2961_v30 = vmul.f32 %v4773_v7, %v4227_v22 }
 0x610   :  { %3118 = vrot.lane.b32.xlu1 %v3071_v3, %s4075_s7  ;;  %3116 = vrot.lane.b32.xlu0 %v3070_v5, %s4075_s7 }
 0x611   :  { %v2919_v61 = vpop.permute.xlu1 %2918  ;;  %v2917_v44 = vpop.permute.xlu0 %2916 }
 0x612   :  { %v2963_v19 = vmul.f32 %v2919_v61, %v4242_v31  ;;  %v2962_v14 = vmul.f32 %v2917_v44, %v4245_v33 }
 0x615   :  { %v2923_v50 = vpop.permute.xlu1 %2922  ;;  %v2921_v29 = vpop.permute.xlu0 %2920 }
 0x616   :  { %v2965_v22 = vmul.f32 %v2923_v50, %v4313_v53  ;;  %v2964_v26 = vmul.f32 %v2921_v29, %v4299_v51 }
 0x619   :  { %v2927_v6 = vpop.permute.xlu1 %2926  ;;  %v2925_v54 = vpop.permute.xlu0 %2924 }
 0x61a   :  { %v2967_v63 = vmul.f32 %v2927_v6, %v4264_v42  ;;  %v2966_v9 = vmul.f32 %v2925_v54, %v4345_v59 }
 0x61d   :  { %v2931_v35 = vpop.permute.xlu1 %2930  ;;  %v2929_v15 = vpop.permute.xlu0 %2928 }
 0x61e   :  { %v2969_v57 = vmul.f32 %v2931_v35, %v4230_v23  ;;  %v2968_v36 = vmul.f32 %v2929_v15, %v4256_v37 }
 0x621   :  { %v2935_v24 = vpop.permute.xlu1 %2934  ;;  %v2933_v27 = vpop.permute.xlu0 %2932 }
 0x622   :  { %v2971_v41 = vmul.f32 %v2935_v24, %v4287_v49  ;;  %v2970_v40 = vmul.f32 %v2933_v27, %v4274_v46 }
 0x625   :  { %v2939_v38 = vpop.permute.xlu1 %2938  ;;  %v2937_v32 = vpop.permute.xlu0 %2936 }
 0x626   :  { %v2973_v43 = vmul.f32 %v2939_v38, %v4322_v55  ;;  %v2972_v56 = vmul.f32 %v2937_v32, %v4306_v52 }
 0x629   :  { %v2943_v11 = vpop.permute.xlu1 %2942  ;;  %v2941_v28 = vpop.permute.xlu0 %2940 }
 0x62a   :  { %v2975_v17 = vmul.f32 %v2943_v11, %v4338_v58  ;;  %v2974_v12 = vmul.f32 %v2941_v28, %v4267_v45 }
 0x666   :  { %v3091_v62 = vpop.permute.xlu1 %3090  ;;  %v3089_v4 = vpop.permute.xlu0 %3088 }
 0x667   :  { %v3137_v20 = vadd.f32 %v3091_v62, %v2961_v30  ;;  %v3136_v60 = vadd.f32 %v3089_v4, %v2960_v8 }
 0x669   :  { %3170 = vrot.lane.b32.xlu1 %v3137_v20, %s4075_s7  ;;  %3168 = vrot.lane.b32.xlu0 %v3136_v60, %s4075_s7 }
 0x66a   :  { %v3095_v48 = vpop.permute.xlu1 %3094  ;;  %v3093_v1 = vpop.permute.xlu0 %3092 }
 0x66b   :  { %v3139_v2 = vadd.f32 %v3095_v48, %v2963_v19  ;;  %v3138_v0 = vadd.f32 %v3093_v1, %v2962_v14 }
 0x66d   :  { %3174 = vrot.lane.b32.xlu1 %v3139_v2, %s4075_s7  ;;  %3172 = vrot.lane.b32.xlu0 %v3138_v0, %s4075_s7 }
 0x66e   :  { %v3099_v7 = vpop.permute.xlu1 %3098  ;;  %v3097_v31 = vpop.permute.xlu0 %3096 }
 0x66f   :  { %v3141_v21 = vadd.f32 %v3099_v7, %v2965_v22  ;;  %v3140_v33 = vadd.f32 %v3097_v31, %v2964_v26 }
 0x671   :  { %3178 = vrot.lane.b32.xlu1 %v3141_v21, %s4075_s7  ;;  %3176 = vrot.lane.b32.xlu0 %v3140_v33, %s4075_s7 }
 0x672   :  { %v3103_v13 = vpop.permute.xlu1 %3102  ;;  %v3101_v53 = vpop.permute.xlu0 %3100 }
 0x673   :  { %v3143_v16 = vadd.f32 %v3103_v13, %v2967_v63  ;;  %v3142_v51 = vadd.f32 %v3101_v53, %v2966_v9 }
 0x675   :  { %3182 = vrot.lane.b32.xlu1 %v3143_v16, %s4075_s7  ;;  %3180 = vrot.lane.b32.xlu0 %v3142_v51, %s4075_s7 }
 0x676   :  { %v3107_v34 = vpop.permute.xlu1 %3106  ;;  %v3105_v42 = vpop.permute.xlu0 %3104 }
 0x677   :  { %v3145_v47 = vadd.f32 %v3107_v34, %v2969_v57  ;;  %v3144_v59 = vadd.f32 %v3105_v42, %v2968_v36 }
 0x679   :  { %3186 = vrot.lane.b32.xlu1 %v3145_v47, %s4075_s7  ;;  %3184 = vrot.lane.b32.xlu0 %v3144_v59, %s4075_s7 }
 0x67a   :  { %v3111_v25 = vpop.permute.xlu1 %3110  ;;  %v3109_v23 = vpop.permute.xlu0 %3108 }
 0x67b   :  { %v3147_v18 = vadd.f32 %v3111_v25, %v2971_v41  ;;  %v3146_v37 = vadd.f32 %v3109_v23, %v2970_v40 }
 0x67d   :  { %3190 = vrot.lane.b32.xlu1 %v3147_v18, %s4075_s7  ;;  %3188 = vrot.lane.b32.xlu0 %v3146_v37, %s4075_s7 }
 0x67e   :  { %v3115_v39 = vpop.permute.xlu1 %3114  ;;  %v3113_v49 = vpop.permute.xlu0 %3112 }
 0x67f   :  { %v3149_v10 = vadd.f32 %v3115_v39, %v2973_v43  ;;  %v3148_v46 = vadd.f32 %v3113_v49, %v2972_v56 }
 0x681   :  { %3194 = vrot.lane.b32.xlu1 %v3149_v10, %s4075_s7  ;;  %3192 = vrot.lane.b32.xlu0 %v3148_v46, %s4075_s7 }
 0x682   :  { %v3119_v3 = vpop.permute.xlu1 %3118  ;;  %v3117_v55 = vpop.permute.xlu0 %3116 }
 0x683   :  { %v3151_v5 = vadd.f32 %v3119_v3, %v2975_v17  ;;  %v3150_v52 = vadd.f32 %v3117_v55, %v2974_v12 }
 0x685   :  { %3198 = vrot.lane.b32.xlu1 %v3151_v5, %s4075_s7  ;;  %3196 = vrot.lane.b32.xlu0 %v3150_v52, %s4075_s7  ;;  %s4089_s7 = smov [#allocation13]  }
 0x686   :  { %s3237_s26 = sshll.u32 %s4089_s7, 4  ;;  %s3238_s26 = int_to_ptr.vmem [resolvable:$true] %s3237_s26 }
 0x687   :  { %s4042_s27 = scalar_lea.vmem %s3238_s26, 2048  ;;  %p4047_p7 = scmp.lt.s32.totalorder %s3238_s26, %s3238_s26 }
 0x688   :  { %p4043_p6 = scmp.ne.s32.totalorder %s3238_s26, %s4042_s27  ;;  %p4048_p8 = scmp.lt.s32.totalorder %s4042_s27, %s4042_s27 }
 0x68a   :  { %p4049_p9 = por %p4048_p8, %p4047_p7 }
 0x68c   :  { %p4050_p10 = pnand %p4049_p9, %p4043_p6 }
 0x6db   :  { %v3171_v61 = vpop.permute.xlu1 %3170  ;;  %v3169_v44 = vpop.permute.xlu0 %3168 }
 0x6dc   :  { %3217 = vst.msk [vmem:[#allocation13 + $0x8] sm:$0xff] %vm127_vm0, %v3171_v61  ;;  %3216 = vst.msk [vmem:[#allocation13] sm:$0xff] %vm127_vm0, %v3169_v44 }
 0x6df   :  { %v3175_v58 = vpop.permute.xlu1 %3174  ;;  %v3173_v45 = vpop.permute.xlu0 %3172 }
 0x6e0   :  { %3219 = vst.msk [vmem:[#allocation13 + $0x18] sm:$0xff] %vm127_vm0, %v3175_v58  ;;  %3218 = vst.msk [vmem:[#allocation13 + $0x10] sm:$0xff] %vm127_vm0, %v3173_v45 }
 0x6e3   :  { %v3179_v50 = vpop.permute.xlu1 %3178  ;;  %v3177_v29 = vpop.permute.xlu0 %3176 }
 0x6e4   :  { %3221 = vst.msk [vmem:[#allocation13 + $0x28] sm:$0xff] %vm127_vm0, %v3179_v50  ;;  %3220 = vst.msk [vmem:[#allocation13 + $0x20] sm:$0xff] %vm127_vm0, %v3177_v29 }
 0x6e7   :  { %v3183_v6 = vpop.permute.xlu1 %3182  ;;  %v3181_v54 = vpop.permute.xlu0 %3180 }
 0x6e8   :  { %3223 = vst.msk [vmem:[#allocation13 + $0x38] sm:$0xff] %vm127_vm0, %v3183_v6  ;;  %3222 = vst.msk [vmem:[#allocation13 + $0x30] sm:$0xff] %vm127_vm0, %v3181_v54 }
 0x6eb   :  { %v3187_v35 = vpop.permute.xlu1 %3186  ;;  %v3185_v15 = vpop.permute.xlu0 %3184 }
 0x6ec   :  { %3225 = vst.msk [vmem:[#allocation13 + $0x48] sm:$0xff] %vm127_vm0, %v3187_v35  ;;  %3224 = vst.msk [vmem:[#allocation13 + $0x40] sm:$0xff] %vm127_vm0, %v3185_v15 }
 0x6ef   :  { %v3191_v24 = vpop.permute.xlu1 %3190  ;;  %v3189_v27 = vpop.permute.xlu0 %3188 }
 0x6f0   :  { %3227 = vst.msk [vmem:[#allocation13 + $0x58] sm:$0xff] %vm127_vm0, %v3191_v24  ;;  %3226 = vst.msk [vmem:[#allocation13 + $0x50] sm:$0xff] %vm127_vm0, %v3189_v27 }
 0x6f3   :  { %v3195_v38 = vpop.permute.xlu1 %3194  ;;  %v3193_v32 = vpop.permute.xlu0 %3192 }
 0x6f4   :  { %3229 = vst.msk [vmem:[#allocation13 + $0x68] sm:$0xff] %vm127_vm0, %v3195_v38  ;;  %3228 = vst.msk [vmem:[#allocation13 + $0x60] sm:$0xff] %vm127_vm0, %v3193_v32 }
 0x6f7   :  { %v3199_v11 = vpop.permute.xlu1 %3198  ;;  %v3197_v28 = vpop.permute.xlu0 %3196 }
 0x6f8   :  { %3231 = vst.msk [vmem:[#allocation13 + $0x78] sm:$0xff] %vm127_vm0, %v3199_v11  ;;  %3230 = vst.msk [vmem:[#allocation13 + $0x70] sm:$0xff] %vm127_vm0, %v3197_v28 }
 0x6f9   :  { %4053 = shalt.err (!%p4050_p10)
}
 0x6fa   :  { %s4054_s30 = scalar_lea.hbm %s4880_s6, 2048 }
 0x6fb   :  { %p4055_p11 = scmp.ne.s32.totalorder %s4880_s6, %s4054_s30  ;;  %p4058_p12 = scmp.lt.u32.totalorder %s4054_s30, %s4880_s6 }
 0x6fd   :  { %p4060_p13 = pnand %p4058_p12, %p4055_p11 }
 0x6ff   :  { %4063 = shalt.err (!%p4060_p13)
}
 0x700   :  { %3243 = dma.vmem_to_hbm [thread:$0]  %s3238_s26, 2048, %s4880_s6, [#allocation4], %s4079_s3, %s4079_s3, %s4080_s10  }
 0x701   :  { %4072 = dma.done.wait [#allocation4], 2048  }
 0x702   :  { %4073 = vsyncadd [#allocation4], 4294965248 }
 0x703   :  { %3247 = vsyncpa [#allocation3], 1 }
 0x704   :  { %3248 = vsyncpa [#allocation6], 1 }
 0x705   :  { %3249 = vsyncpa [#allocation9], 1 }
 0x706   :  { %3250 = vsyncpa [#allocation12], 1 }
 0x707   :  { %3251 = vsyncpa [#allocation4], 1 }

</bundles_post_ra>
